<compile_context>
chip_gen: v6e
topology: v6e:2x2x1
jax: 0.10.0
libtpu: 0.0.40
codegen_flags: <defaults>
</compile_context>

<pallas_src>
import numpy as np
import jax
import jax.numpy as jnp
from jax.experimental import pallas as pl
from jax.experimental.pallas import tpu as pltpu  # noqa: F401  (TPU backend assumed)

# ---------------- config (module defaults, small sizes) ------------------------
HEADS = 2
N_PER_HEAD = 10
N_EMBD = HEADS * N_PER_HEAD            # 20
EMBED_FEATURES = 20                    # == sa_layer "features"
OUTPUT_DIM = 1
CONV_CH = 3                            # EmbedConv channels=3
KSIZE = 3


def _round_up(x, m):
    return ((x + m - 1) // m) * m


# ---------------- fused kernel: conv embed + attention + norm + pool + head ----
def make_fused_kernel(bs, set_size, d, H, W):
    F = EMBED_FEATURES
    HP, WP = H + 2, W + 2              # conv padding=1 baked into the input buffer
    HPWP = HP * WP                     # flattened padded image length
    SH = WP + 1                        # |largest 3x3 tap offset| = WP + 1
    wrow = d * KSIZE * KSIZE           # conv weights per output channel (+1 bias col)
    scale = 1.0 / np.sqrt(N_EMBD / HEADS)      # reference: /sqrt(n_embd/heads)
    n_norm = set_size * F                      # elements per sample for mean/std

    def kernel(x_ref, convw_ref, wep_ref, wqkvp_ref, w1_ref, bslab_ref, out_ref):
        # ---------- 3x3 conv: 9*d shifted MACs on the zero-bordered image -------
        # x_ref: (d, bs, set, BUFW).  The window starting at lane SH+off is exactly
        # the (kh, kw) tap of a padding=1 conv (border zeros live in the buffer),
        # so no boundary masks, no roll, no im2col and no O(HW^2) weight.
        acc = [None] * CONV_CH                     # per conv output channel
        for ci in range(d):
            plane = x_ref[ci]                      # (bs, set, BUFW)
            for kh in range(KSIZE):
                for kw in range(KSIZE):
                    start = SH + (kh - 1) * WP + (kw - 1)
                    win = plane[:, :, start:start + HPWP]       # (bs, set, HPWP)
                    col = ci * KSIZE * KSIZE + kh * KSIZE + kw
                    for co in range(CONV_CH):
                        w_s = convw_ref[co:co + 1, col:col + 1]  # (1,1) scalar
                        term = w_s * win
                        acc[co] = term if acc[co] is None else acc[co] + term

        # ---------- Tanh + flatten + Linear(3*H*W -> F), per conv channel -------
        # Border rows of wep are zero, so junk conv values at padded-border
        # positions never reach the embedding.
        emb = None
        for co in range(CONV_CH):
            b_s = convw_ref[co:co + 1, wrow:wrow + 1]            # conv bias (1,1)
            act = jnp.tanh(acc[co] + b_s)                        # (bs, set, HPWP)
            we_b = jnp.broadcast_to(wep_ref[co], (bs, HPWP, F))
            contrib = jnp.einsum('bsh,bhf->bsf', act, we_b,
                                 preferred_element_type=jnp.float32)
            emb = contrib if emb is None else emb + contrib
        emb = emb + bslab_ref[0:1, 0:F]                          # + be -> (bs,set,F)
        # (EmbedConv Dropout is an inference no-op.)

        # ---------- self-attention block, batched over bs (no cross-batch work) -
        post = None
        for h in range(HEADS):                                   # static unroll
            wq_b = jnp.broadcast_to(wqkvp_ref[0 * HEADS + h], (bs, F, N_PER_HEAD))
            wk_b = jnp.broadcast_to(wqkvp_ref[1 * HEADS + h], (bs, F, N_PER_HEAD))
            wv_b = jnp.broadcast_to(wqkvp_ref[2 * HEADS + h], (bs, F, N_PER_HEAD))
            qh = jnp.einsum('bsf,bfd->bsd', emb, wq_b,
                            preferred_element_type=jnp.float32)
            kh_ = jnp.einsum('bsf,bfd->bsd', emb, wk_b,
                             preferred_element_type=jnp.float32)
            vh = jnp.einsum('bsf,bfd->bsd', emb, wv_b,
                            preferred_element_type=jnp.float32)
            logits = jnp.einsum('bqd,bkd->bqk', qh, kh_,
                                preferred_element_type=jnp.float32) * scale
            logits = logits - jnp.max(logits, axis=-1, keepdims=True)
            e = jnp.exp(logits)
            # approx reciprocal (EUP slot) is fine for the softmax denominator
            p = e * pl.reciprocal(jnp.sum(e, axis=-1, keepdims=True), approx=True)
            att = jnp.einsum('bqk,bkd->bqd', p, vh,
                             preferred_element_type=jnp.float32)
            # post_mlp, stored transposed per head -> trailing-axis contraction
            wp_b = jnp.broadcast_to(wqkvp_ref[3 * HEADS + h], (bs, F, N_PER_HEAD))
            contrib = jnp.einsum('bsd,bfd->bsf', att, wp_b,
                                 preferred_element_type=jnp.float32)
            post = contrib if post is None else post + contrib

        xr = emb + post                                          # residual (bs,set,F)

        # ---------- per-sample normalization: mean / unbiased std over (set, F) -
        ones_s = jnp.ones((bs, 1, set_size), jnp.float32)
        sum_f = jnp.einsum('bos,bsf->bof', ones_s, xr,
                           preferred_element_type=jnp.float32)   # (bs,1,F)
        mu = jnp.sum(sum_f, axis=-1, keepdims=True) * (1.0 / n_norm)     # (bs,1,1)
        dev = xr - mu
        d2 = jnp.einsum('bos,bsf->bof', ones_s, dev * dev,
                        preferred_element_type=jnp.float32)
        var = jnp.sum(d2, axis=-1, keepdims=True) * (1.0 / (n_norm - 1))
        std = jnp.sqrt(var)
        xn = dev / (std + 1e-6)          # exact divide: parity with (x-mu)/(std+eps)

        # ---------- avg pool over entities + MLP head ----------------------------
        pooled = jnp.einsum('bos,bsf->bof', ones_s, xn,
                            preferred_element_type=jnp.float32) * (1.0 / set_size)
        w1_b = jnp.broadcast_to(w1_ref[...], (bs, F, 2 * F))
        h1 = jnp.tanh(jnp.einsum('bof,bfk->bok', pooled, w1_b,
                                 preferred_element_type=jnp.float32)
                      + bslab_ref[1:2, :])                        # (bs, 1, 2F)
        w2_row = bslab_ref[3:4, :]                                # (1, 2F) == w2^T
        out = (jnp.sum(h1 * w2_row, axis=-1, keepdims=True)
               + bslab_ref[2:3, 0:OUTPUT_DIM])                    # (bs, 1, 1)
        out_ref[...] = out

    return kernel


# ---------------- host-side glue: padded buffer, params, full forward ----------
def build_conv_input(x):
    """(bs, set, d, H, W) -> (d, bs, set, BUFW) zero-bordered flattened buffers."""
    bs, set_size, d, H, W = x.shape
    HP, WP = H + 2, W + 2
    HPWP = HP * WP
    SH = WP + 1
    BUFW = _round_up(HPWP + 2 * SH, 128)
    xp = jnp.pad(x, ((0, 0), (0, 0), (0, 0), (1, 1), (1, 1)))      # conv padding=1
    xp = xp.reshape(bs, set_size, d, HPWP).transpose(2, 0, 1, 3)   # (d,bs,set,HPWP)
    buf = jnp.zeros((d, bs, set_size, BUFW), jnp.float32)
    return buf.at[:, :, :, SH:SH + HPWP].set(xp.astype(jnp.float32))


def init_params(key, d, H, W):
    F = EMBED_FEATURES
    HP, WP = H + 2, W + 2
    HPWP = HP * WP
    wrow = d * KSIZE * KSIZE
    ks = jax.random.split(key, 12)
    std_attn = 1.0 / np.sqrt(N_EMBD)

    # --- EmbedConv (synthesized): Conv2d(d->3,3,1,1) -> Tanh -> flatten -> Linear
    wc = jax.random.normal(ks[0], (CONV_CH, d, KSIZE, KSIZE), jnp.float32) * 0.1
    bc = jax.random.normal(ks[1], (CONV_CH,), jnp.float32) * 0.01
    convw = jnp.concatenate([wc.reshape(CONV_CH, wrow),
                             bc.reshape(CONV_CH, 1)], axis=1)      # (3, d*9+1)

    # Embedding Linear weight, scattered into padded-image row layout; border
    # rows stay zero (NCHW channel-major flatten order).
    we_core = (jax.random.normal(ks[2], (CONV_CH, H, W, F), jnp.float32)
               * (1.0 / np.sqrt(CONV_CH * H * W)))
    wep = jnp.zeros((CONV_CH, HP, WP, F), jnp.float32)
    wep = wep.at[:, 1:H + 1, 1:W + 1, :].set(we_core).reshape(CONV_CH, HPWP, F)
    be = jax.random.normal(ks[3], (F,), jnp.float32) * 0.01

    # --- self_attention_block (bias=False, std=1/sqrt(n_embd)); per-head packed,
    #     (in, out) orientation; post_mlp stored transposed per head.
    wq = jax.random.normal(ks[4], (HEADS, F, N_PER_HEAD), jnp.float32) * std_attn
    wk = jax.random.normal(ks[5], (HEADS, F, N_PER_HEAD), jnp.float32) * std_attn
    wv = jax.random.normal(ks[6], (HEADS, F, N_PER_HEAD), jnp.float32) * std_attn
    wpT = jax.random.normal(ks[7], (HEADS, F, N_PER_HEAD), jnp.float32) * std_attn
    wqkvp = jnp.stack([wq, wk, wv, wpT]).reshape(4 * HEADS, F, N_PER_HEAD)

    # --- post_layers: Linear(F, 2F) -> Tanh -> Linear(2F, 1), PyTorch default init
    lim1, lim2 = 1.0 / np.sqrt(F), 1.0 / np.sqrt(2 * F)
    w1 = jax.random.uniform(ks[8], (F, 2 * F), jnp.float32, -lim1, lim1)
    b1 = jax.random.uniform(ks[9], (2 * F,), jnp.float32, -lim1, lim1)
    w2 = jax.random.uniform(ks[10], (2 * F, OUTPUT_DIM), jnp.float32, -lim2, lim2)
    b2 = jax.random.uniform(ks[11], (OUTPUT_DIM,), jnp.float32, -lim2, lim2)

    # Tiny-vector slab (one DMA): row0 = be, row1 = b1, row2 = b2, row3 = w2^T.
    bslab = jnp.zeros((4, 2 * F), jnp.float32)
    bslab = bslab.at[0, :F].set(be)
    bslab = bslab.at[1, :].set(b1)
    bslab = bslab.at[2, :OUTPUT_DIM].set(b2)
    bslab = bslab.at[3, :].set(w2[:, 0])           # OUTPUT_DIM == 1
    return {"convw": convw, "wep": wep, "wqkvp": wqkvp, "w1": w1, "bslab": bslab}


def image_attention_forward(x, params):
    # x: (bs, set_size, d, H, W)  ->  (bs, OUTPUT_DIM)
    bs, set_size, d, H, W = x.shape
    xbuf = build_conv_input(x)
    kernel = make_fused_kernel(bs, set_size, d, H, W)
    # Single grid-less invocation: every operand is a whole-array VMEM block,
    # DMA'd exactly once (6 operands total; <100 KiB live data).
    out3 = pl.pallas_call(
        kernel,
        out_shape=jax.ShapeDtypeStruct((bs, 1, OUTPUT_DIM), jnp.float32),
    )(xbuf, params["convw"], params["wep"], params["wqkvp"],
      params["w1"], params["bslab"])
    return out3.reshape(bs, OUTPUT_DIM)


if __name__ == "__main__":
    bs, set_size = 2, 4
    d, H, W = 1, 8, 8                              # small entity_size = [1, 8, 8]
    key = jax.random.PRNGKey(0)
    kx, kp = jax.random.split(key)
    x = jax.random.normal(kx, (bs, set_size, d, H, W), jnp.float32)
    params = init_params(kp, d, H, W)

    fwd = jax.jit(image_attention_forward)
    out = jax.block_until_ready(fwd(x, params))
    assert out.shape == (bs, OUTPUT_DIM)
    assert bool(jnp.all(jnp.isfinite(out)))
    print("KERNEL_OK")
</pallas_src>

<mosaic_0001>
module attributes {stable_mosaic.version = 11 : i64} {
  func.func @kernel(%arg0: memref<1x2x4x128xf32, #tpu.memory_space<vmem>>, %arg1: memref<3x10xf32, #tpu.memory_space<vmem>>, %arg2: memref<3x100x20xf32, #tpu.memory_space<vmem>>, %arg3: memref<8x20x10xf32, #tpu.memory_space<vmem>>, %arg4: memref<20x40xf32, #tpu.memory_space<vmem>>, %arg5: memref<4x40xf32, #tpu.memory_space<vmem>>, %arg6: memref<2x1x1xf32, #tpu.memory_space<vmem>>) attributes {dimension_semantics = [], scalar_prefetch = 0 : i64, scratch_operands = 0 : i64, tpu.core_type = #tpu.core_type<tc>} {
    %c0 = arith.constant 0 : index
    %c0_0 = arith.constant 0 : index
    %c0_1 = arith.constant 0 : index
    %c0_2 = arith.constant 0 : index
    %0 = vector.load %arg0[%c0, %c0_0, %c0_1, %c0_2] : memref<1x2x4x128xf32, #tpu.memory_space<vmem>>, vector<1x2x4x128xf32>
    %1 = vector.shape_cast %0 : vector<1x2x4x128xf32> to vector<2x4x128xf32>
    %2 = vector.extract_strided_slice %1 {offsets = [0, 0, 0], sizes = [2, 4, 100], strides = [1, 1, 1]} : vector<2x4x128xf32> to vector<2x4x100xf32>
    %c0_3 = arith.constant 0 : index
    %c0_4 = arith.constant 0 : index
    %3 = vector.load %arg1[%c0_3, %c0_4] : memref<3x10xf32, #tpu.memory_space<vmem>>, vector<1x1xf32>
    %4 = vector.shape_cast %3 : vector<1x1xf32> to vector<1x1x1xf32>
    %5 = vector.broadcast %4 : vector<1x1x1xf32> to vector<2x4x100xf32>
    %6 = arith.mulf %5, %2 : vector<2x4x100xf32>
    %c1 = arith.constant 1 : index
    %c0_5 = arith.constant 0 : index
    %7 = vector.load %arg1[%c1, %c0_5] : memref<3x10xf32, #tpu.memory_space<vmem>>, vector<1x1xf32>
    %8 = vector.shape_cast %7 : vector<1x1xf32> to vector<1x1x1xf32>
    %9 = vector.broadcast %8 : vector<1x1x1xf32> to vector<2x4x100xf32>
    %10 = arith.mulf %9, %2 : vector<2x4x100xf32>
    %c2 = arith.constant 2 : index
    %c0_6 = arith.constant 0 : index
    %11 = vector.load %arg1[%c2, %c0_6] : memref<3x10xf32, #tpu.memory_space<vmem>>, vector<1x1xf32>
    %12 = vector.shape_cast %11 : vector<1x1xf32> to vector<1x1x1xf32>
    %13 = vector.broadcast %12 : vector<1x1x1xf32> to vector<2x4x100xf32>
    %14 = arith.mulf %13, %2 : vector<2x4x100xf32>
    %15 = vector.extract_strided_slice %1 {offsets = [0, 0, 1], sizes = [2, 4, 100], strides = [1, 1, 1]} : vector<2x4x128xf32> to vector<2x4x100xf32>
    %c0_7 = arith.constant 0 : index
    %c1_8 = arith.constant 1 : index
    %16 = vector.load %arg1[%c0_7, %c1_8] : memref<3x10xf32, #tpu.memory_space<vmem>>, vector<1x1xf32>
    %17 = vector.shape_cast %16 : vector<1x1xf32> to vector<1x1x1xf32>
    %18 = vector.broadcast %17 : vector<1x1x1xf32> to vector<2x4x100xf32>
    %19 = arith.mulf %18, %15 : vector<2x4x100xf32>
    %20 = arith.addf %6, %19 : vector<2x4x100xf32>
    %c1_9 = arith.constant 1 : index
    %c1_10 = arith.constant 1 : index
    %21 = vector.load %arg1[%c1_9, %c1_10] : memref<3x10xf32, #tpu.memory_space<vmem>>, vector<1x1xf32>
    %22 = vector.shape_cast %21 : vector<1x1xf32> to vector<1x1x1xf32>
    %23 = vector.broadcast %22 : vector<1x1x1xf32> to vector<2x4x100xf32>
    %24 = arith.mulf %23, %15 : vector<2x4x100xf32>
    %25 = arith.addf %10, %24 : vector<2x4x100xf32>
    %c2_11 = arith.constant 2 : index
    %c1_12 = arith.constant 1 : index
    %26 = vector.load %arg1[%c2_11, %c1_12] : memref<3x10xf32, #tpu.memory_space<vmem>>, vector<1x1xf32>
    %27 = vector.shape_cast %26 : vector<1x1xf32> to vector<1x1x1xf32>
    %28 = vector.broadcast %27 : vector<1x1x1xf32> to vector<2x4x100xf32>
    %29 = arith.mulf %28, %15 : vector<2x4x100xf32>
    %30 = arith.addf %14, %29 : vector<2x4x100xf32>
    %31 = vector.extract_strided_slice %1 {offsets = [0, 0, 2], sizes = [2, 4, 100], strides = [1, 1, 1]} : vector<2x4x128xf32> to vector<2x4x100xf32>
    %c0_13 = arith.constant 0 : index
    %c2_14 = arith.constant 2 : index
    %32 = vector.load %arg1[%c0_13, %c2_14] : memref<3x10xf32, #tpu.memory_space<vmem>>, vector<1x1xf32>
    %33 = vector.shape_cast %32 : vector<1x1xf32> to vector<1x1x1xf32>
    %34 = vector.broadcast %33 : vector<1x1x1xf32> to vector<2x4x100xf32>
    %35 = arith.mulf %34, %31 : vector<2x4x100xf32>
    %36 = arith.addf %20, %35 : vector<2x4x100xf32>
    %c1_15 = arith.constant 1 : index
    %c2_16 = arith.constant 2 : index
    %37 = vector.load %arg1[%c1_15, %c2_16] : memref<3x10xf32, #tpu.memory_space<vmem>>, vector<1x1xf32>
    %38 = vector.shape_cast %37 : vector<1x1xf32> to vector<1x1x1xf32>
    %39 = vector.broadcast %38 : vector<1x1x1xf32> to vector<2x4x100xf32>
    %40 = arith.mulf %39, %31 : vector<2x4x100xf32>
    %41 = arith.addf %25, %40 : vector<2x4x100xf32>
    %c2_17 = arith.constant 2 : index
    %c2_18 = arith.constant 2 : index
    %42 = vector.load %arg1[%c2_17, %c2_18] : memref<3x10xf32, #tpu.memory_space<vmem>>, vector<1x1xf32>
    %43 = vector.shape_cast %42 : vector<1x1xf32> to vector<1x1x1xf32>
    %44 = vector.broadcast %43 : vector<1x1x1xf32> to vector<2x4x100xf32>
    %45 = arith.mulf %44, %31 : vector<2x4x100xf32>
    %46 = arith.addf %30, %45 : vector<2x4x100xf32>
    %47 = vector.extract_strided_slice %1 {offsets = [0, 0, 10], sizes = [2, 4, 100], strides = [1, 1, 1]} : vector<2x4x128xf32> to vector<2x4x100xf32>
    %c0_19 = arith.constant 0 : index
    %c3 = arith.constant 3 : index
    %48 = vector.load %arg1[%c0_19, %c3] : memref<3x10xf32, #tpu.memory_space<vmem>>, vector<1x1xf32>
    %49 = vector.shape_cast %48 : vector<1x1xf32> to vector<1x1x1xf32>
    %50 = vector.broadcast %49 : vector<1x1x1xf32> to vector<2x4x100xf32>
    %51 = arith.mulf %50, %47 : vector<2x4x100xf32>
    %52 = arith.addf %36, %51 : vector<2x4x100xf32>
    %c1_20 = arith.constant 1 : index
    %c3_21 = arith.constant 3 : index
    %53 = vector.load %arg1[%c1_20, %c3_21] : memref<3x10xf32, #tpu.memory_space<vmem>>, vector<1x1xf32>
    %54 = vector.shape_cast %53 : vector<1x1xf32> to vector<1x1x1xf32>
    %55 = vector.broadcast %54 : vector<1x1x1xf32> to vector<2x4x100xf32>
    %56 = arith.mulf %55, %47 : vector<2x4x100xf32>
    %57 = arith.addf %41, %56 : vector<2x4x100xf32>
    %c2_22 = arith.constant 2 : index
    %c3_23 = arith.constant 3 : index
    %58 = vector.load %arg1[%c2_22, %c3_23] : memref<3x10xf32, #tpu.memory_space<vmem>>, vector<1x1xf32>
    %59 = vector.shape_cast %58 : vector<1x1xf32> to vector<1x1x1xf32>
    %60 = vector.broadcast %59 : vector<1x1x1xf32> to vector<2x4x100xf32>
    %61 = arith.mulf %60, %47 : vector<2x4x100xf32>
    %62 = arith.addf %46, %61 : vector<2x4x100xf32>
    %63 = vector.extract_strided_slice %1 {offsets = [0, 0, 11], sizes = [2, 4, 100], strides = [1, 1, 1]} : vector<2x4x128xf32> to vector<2x4x100xf32>
    %c0_24 = arith.constant 0 : index
    %c4 = arith.constant 4 : index
    %64 = vector.load %arg1[%c0_24, %c4] : memref<3x10xf32, #tpu.memory_space<vmem>>, vector<1x1xf32>
    %65 = vector.shape_cast %64 : vector<1x1xf32> to vector<1x1x1xf32>
    %66 = vector.broadcast %65 : vector<1x1x1xf32> to vector<2x4x100xf32>
    %67 = arith.mulf %66, %63 : vector<2x4x100xf32>
    %68 = arith.addf %52, %67 : vector<2x4x100xf32>
    %c1_25 = arith.constant 1 : index
    %c4_26 = arith.constant 4 : index
    %69 = vector.load %arg1[%c1_25, %c4_26] : memref<3x10xf32, #tpu.memory_space<vmem>>, vector<1x1xf32>
    %70 = vector.shape_cast %69 : vector<1x1xf32> to vector<1x1x1xf32>
    %71 = vector.broadcast %70 : vector<1x1x1xf32> to vector<2x4x100xf32>
    %72 = arith.mulf %71, %63 : vector<2x4x100xf32>
    %73 = arith.addf %57, %72 : vector<2x4x100xf32>
    %c2_27 = arith.constant 2 : index
    %c4_28 = arith.constant 4 : index
    %74 = vector.load %arg1[%c2_27, %c4_28] : memref<3x10xf32, #tpu.memory_space<vmem>>, vector<1x1xf32>
    %75 = vector.shape_cast %74 : vector<1x1xf32> to vector<1x1x1xf32>
    %76 = vector.broadcast %75 : vector<1x1x1xf32> to vector<2x4x100xf32>
    %77 = arith.mulf %76, %63 : vector<2x4x100xf32>
    %78 = arith.addf %62, %77 : vector<2x4x100xf32>
    %79 = vector.extract_strided_slice %1 {offsets = [0, 0, 12], sizes = [2, 4, 100], strides = [1, 1, 1]} : vector<2x4x128xf32> to vector<2x4x100xf32>
    %c0_29 = arith.constant 0 : index
    %c5 = arith.constant 5 : index
    %80 = vector.load %arg1[%c0_29, %c5] : memref<3x10xf32, #tpu.memory_space<vmem>>, vector<1x1xf32>
    %81 = vector.shape_cast %80 : vector<1x1xf32> to vector<1x1x1xf32>
    %82 = vector.broadcast %81 : vector<1x1x1xf32> to vector<2x4x100xf32>
    %83 = arith.mulf %82, %79 : vector<2x4x100xf32>
    %84 = arith.addf %68, %83 : vector<2x4x100xf32>
    %c1_30 = arith.constant 1 : index
    %c5_31 = arith.constant 5 : index
    %85 = vector.load %arg1[%c1_30, %c5_31] : memref<3x10xf32, #tpu.memory_space<vmem>>, vector<1x1xf32>
    %86 = vector.shape_cast %85 : vector<1x1xf32> to vector<1x1x1xf32>
    %87 = vector.broadcast %86 : vector<1x1x1xf32> to vector<2x4x100xf32>
    %88 = arith.mulf %87, %79 : vector<2x4x100xf32>
    %89 = arith.addf %73, %88 : vector<2x4x100xf32>
    %c2_32 = arith.constant 2 : index
    %c5_33 = arith.constant 5 : index
    %90 = vector.load %arg1[%c2_32, %c5_33] : memref<3x10xf32, #tpu.memory_space<vmem>>, vector<1x1xf32>
    %91 = vector.shape_cast %90 : vector<1x1xf32> to vector<1x1x1xf32>
    %92 = vector.broadcast %91 : vector<1x1x1xf32> to vector<2x4x100xf32>
    %93 = arith.mulf %92, %79 : vector<2x4x100xf32>
    %94 = arith.addf %78, %93 : vector<2x4x100xf32>
    %95 = vector.extract_strided_slice %1 {offsets = [0, 0, 20], sizes = [2, 4, 100], strides = [1, 1, 1]} : vector<2x4x128xf32> to vector<2x4x100xf32>
    %c0_34 = arith.constant 0 : index
    %c6 = arith.constant 6 : index
    %96 = vector.load %arg1[%c0_34, %c6] : memref<3x10xf32, #tpu.memory_space<vmem>>, vector<1x1xf32>
    %97 = vector.shape_cast %96 : vector<1x1xf32> to vector<1x1x1xf32>
    %98 = vector.broadcast %97 : vector<1x1x1xf32> to vector<2x4x100xf32>
    %99 = arith.mulf %98, %95 : vector<2x4x100xf32>
    %100 = arith.addf %84, %99 : vector<2x4x100xf32>
    %c1_35 = arith.constant 1 : index
    %c6_36 = arith.constant 6 : index
    %101 = vector.load %arg1[%c1_35, %c6_36] : memref<3x10xf32, #tpu.memory_space<vmem>>, vector<1x1xf32>
    %102 = vector.shape_cast %101 : vector<1x1xf32> to vector<1x1x1xf32>
    %103 = vector.broadcast %102 : vector<1x1x1xf32> to vector<2x4x100xf32>
    %104 = arith.mulf %103, %95 : vector<2x4x100xf32>
    %105 = arith.addf %89, %104 : vector<2x4x100xf32>
    %c2_37 = arith.constant 2 : index
    %c6_38 = arith.constant 6 : index
    %106 = vector.load %arg1[%c2_37, %c6_38] : memref<3x10xf32, #tpu.memory_space<vmem>>, vector<1x1xf32>
    %107 = vector.shape_cast %106 : vector<1x1xf32> to vector<1x1x1xf32>
    %108 = vector.broadcast %107 : vector<1x1x1xf32> to vector<2x4x100xf32>
    %109 = arith.mulf %108, %95 : vector<2x4x100xf32>
    %110 = arith.addf %94, %109 : vector<2x4x100xf32>
    %111 = vector.extract_strided_slice %1 {offsets = [0, 0, 21], sizes = [2, 4, 100], strides = [1, 1, 1]} : vector<2x4x128xf32> to vector<2x4x100xf32>
    %c0_39 = arith.constant 0 : index
    %c7 = arith.constant 7 : index
    %112 = vector.load %arg1[%c0_39, %c7] : memref<3x10xf32, #tpu.memory_space<vmem>>, vector<1x1xf32>
    %113 = vector.shape_cast %112 : vector<1x1xf32> to vector<1x1x1xf32>
    %114 = vector.broadcast %113 : vector<1x1x1xf32> to vector<2x4x100xf32>
    %115 = arith.mulf %114, %111 : vector<2x4x100xf32>
    %116 = arith.addf %100, %115 : vector<2x4x100xf32>
    %c1_40 = arith.constant 1 : index
    %c7_41 = arith.constant 7 : index
    %117 = vector.load %arg1[%c1_40, %c7_41] : memref<3x10xf32, #tpu.memory_space<vmem>>, vector<1x1xf32>
    %118 = vector.shape_cast %117 : vector<1x1xf32> to vector<1x1x1xf32>
    %119 = vector.broadcast %118 : vector<1x1x1xf32> to vector<2x4x100xf32>
    %120 = arith.mulf %119, %111 : vector<2x4x100xf32>
    %121 = arith.addf %105, %120 : vector<2x4x100xf32>
    %c2_42 = arith.constant 2 : index
    %c7_43 = arith.constant 7 : index
    %122 = vector.load %arg1[%c2_42, %c7_43] : memref<3x10xf32, #tpu.memory_space<vmem>>, vector<1x1xf32>
    %123 = vector.shape_cast %122 : vector<1x1xf32> to vector<1x1x1xf32>
    %124 = vector.broadcast %123 : vector<1x1x1xf32> to vector<2x4x100xf32>
    %125 = arith.mulf %124, %111 : vector<2x4x100xf32>
    %126 = arith.addf %110, %125 : vector<2x4x100xf32>
    %127 = vector.extract_strided_slice %1 {offsets = [0, 0, 22], sizes = [2, 4, 100], strides = [1, 1, 1]} : vector<2x4x128xf32> to vector<2x4x100xf32>
    %c0_44 = arith.constant 0 : index
    %c8 = arith.constant 8 : index
    %128 = vector.load %arg1[%c0_44, %c8] : memref<3x10xf32, #tpu.memory_space<vmem>>, vector<1x1xf32>
    %129 = vector.shape_cast %128 : vector<1x1xf32> to vector<1x1x1xf32>
    %130 = vector.broadcast %129 : vector<1x1x1xf32> to vector<2x4x100xf32>
    %131 = arith.mulf %130, %127 : vector<2x4x100xf32>
    %132 = arith.addf %116, %131 : vector<2x4x100xf32>
    %c1_45 = arith.constant 1 : index
    %c8_46 = arith.constant 8 : index
    %133 = vector.load %arg1[%c1_45, %c8_46] : memref<3x10xf32, #tpu.memory_space<vmem>>, vector<1x1xf32>
    %134 = vector.shape_cast %133 : vector<1x1xf32> to vector<1x1x1xf32>
    %135 = vector.broadcast %134 : vector<1x1x1xf32> to vector<2x4x100xf32>
    %136 = arith.mulf %135, %127 : vector<2x4x100xf32>
    %137 = arith.addf %121, %136 : vector<2x4x100xf32>
    %c2_47 = arith.constant 2 : index
    %c8_48 = arith.constant 8 : index
    %138 = vector.load %arg1[%c2_47, %c8_48] : memref<3x10xf32, #tpu.memory_space<vmem>>, vector<1x1xf32>
    %139 = vector.shape_cast %138 : vector<1x1xf32> to vector<1x1x1xf32>
    %140 = vector.broadcast %139 : vector<1x1x1xf32> to vector<2x4x100xf32>
    %141 = arith.mulf %140, %127 : vector<2x4x100xf32>
    %142 = arith.addf %126, %141 : vector<2x4x100xf32>
    %c0_49 = arith.constant 0 : index
    %c9 = arith.constant 9 : index
    %143 = vector.load %arg1[%c0_49, %c9] : memref<3x10xf32, #tpu.memory_space<vmem>>, vector<1x1xf32>
    %144 = vector.shape_cast %143 : vector<1x1xf32> to vector<1x1x1xf32>
    %145 = vector.broadcast %144 : vector<1x1x1xf32> to vector<2x4x100xf32>
    %146 = arith.addf %132, %145 : vector<2x4x100xf32>
    %147 = math.tanh %146 : vector<2x4x100xf32>
    %c0_50 = arith.constant 0 : index
    %c0_51 = arith.constant 0 : index
    %c0_52 = arith.constant 0 : index
    %148 = vector.load %arg2[%c0_50, %c0_51, %c0_52] : memref<3x100x20xf32, #tpu.memory_space<vmem>>, vector<1x100x20xf32>
    %149 = vector.shape_cast %148 : vector<1x100x20xf32> to vector<100x20xf32>
    %150 = vector.shape_cast %149 : vector<100x20xf32> to vector<1x100x20xf32>
    %151 = vector.broadcast %150 : vector<1x100x20xf32> to vector<2x100x20xf32>
    "tpu.trace_start"() <{level = 10 : i32, message = "bsh,bhf->bsf"}> : () -> ()
    %cst = arith.constant dense<0.000000e+00> : vector<2x4x20xf32>
    %152 = tpu.matmul %147, %151, %cst {dimension_numbers = #tpu.dot_dimension_numbers<[2], [1], [1], [2], [0, 0, 0, 1, 1, 2], [0], [0]>} : vector<2x4x100xf32>, vector<2x100x20xf32>, vector<2x4x20xf32> -> vector<2x4x20xf32>
    "tpu.trace_stop"() : () -> ()
    %c1_53 = arith.constant 1 : index
    %c9_54 = arith.constant 9 : index
    %153 = vector.load %arg1[%c1_53, %c9_54] : memref<3x10xf32, #tpu.memory_space<vmem>>, vector<1x1xf32>
    %154 = vector.shape_cast %153 : vector<1x1xf32> to vector<1x1x1xf32>
    %155 = vector.broadcast %154 : vector<1x1x1xf32> to vector<2x4x100xf32>
    %156 = arith.addf %137, %155 : vector<2x4x100xf32>
    %157 = math.tanh %156 : vector<2x4x100xf32>
    %c1_55 = arith.constant 1 : index
    %c0_56 = arith.constant 0 : index
    %c0_57 = arith.constant 0 : index
    %158 = vector.load %arg2[%c1_55, %c0_56, %c0_57] : memref<3x100x20xf32, #tpu.memory_space<vmem>>, vector<1x100x20xf32>
    %159 = vector.shape_cast %158 : vector<1x100x20xf32> to vector<100x20xf32>
    %160 = vector.shape_cast %159 : vector<100x20xf32> to vector<1x100x20xf32>
    %161 = vector.broadcast %160 : vector<1x100x20xf32> to vector<2x100x20xf32>
    "tpu.trace_start"() <{level = 10 : i32, message = "bsh,bhf->bsf"}> : () -> ()
    %cst_58 = arith.constant dense<0.000000e+00> : vector<2x4x20xf32>
    %162 = tpu.matmul %157, %161, %cst_58 {dimension_numbers = #tpu.dot_dimension_numbers<[2], [1], [1], [2], [0, 0, 0, 1, 1, 2], [0], [0]>} : vector<2x4x100xf32>, vector<2x100x20xf32>, vector<2x4x20xf32> -> vector<2x4x20xf32>
    "tpu.trace_stop"() : () -> ()
    %163 = arith.addf %152, %162 : vector<2x4x20xf32>
    %c2_59 = arith.constant 2 : index
    %c9_60 = arith.constant 9 : index
    %164 = vector.load %arg1[%c2_59, %c9_60] : memref<3x10xf32, #tpu.memory_space<vmem>>, vector<1x1xf32>
    %165 = vector.shape_cast %164 : vector<1x1xf32> to vector<1x1x1xf32>
    %166 = vector.broadcast %165 : vector<1x1x1xf32> to vector<2x4x100xf32>
    %167 = arith.addf %142, %166 : vector<2x4x100xf32>
    %168 = math.tanh %167 : vector<2x4x100xf32>
    %c2_61 = arith.constant 2 : index
    %c0_62 = arith.constant 0 : index
    %c0_63 = arith.constant 0 : index
    %169 = vector.load %arg2[%c2_61, %c0_62, %c0_63] : memref<3x100x20xf32, #tpu.memory_space<vmem>>, vector<1x100x20xf32>
    %170 = vector.shape_cast %169 : vector<1x100x20xf32> to vector<100x20xf32>
    %171 = vector.shape_cast %170 : vector<100x20xf32> to vector<1x100x20xf32>
    %172 = vector.broadcast %171 : vector<1x100x20xf32> to vector<2x100x20xf32>
    "tpu.trace_start"() <{level = 10 : i32, message = "bsh,bhf->bsf"}> : () -> ()
    %cst_64 = arith.constant dense<0.000000e+00> : vector<2x4x20xf32>
    %173 = tpu.matmul %168, %172, %cst_64 {dimension_numbers = #tpu.dot_dimension_numbers<[2], [1], [1], [2], [0, 0, 0, 1, 1, 2], [0], [0]>} : vector<2x4x100xf32>, vector<2x100x20xf32>, vector<2x4x20xf32> -> vector<2x4x20xf32>
    "tpu.trace_stop"() : () -> ()
    %174 = arith.addf %163, %173 : vector<2x4x20xf32>
    %c0_65 = arith.constant 0 : index
    %c0_66 = arith.constant 0 : index
    %175 = vector.load %arg5[%c0_65, %c0_66] : memref<4x40xf32, #tpu.memory_space<vmem>>, vector<1x20xf32>
    %176 = vector.shape_cast %175 : vector<1x20xf32> to vector<1x1x20xf32>
    %177 = vector.broadcast %176 : vector<1x1x20xf32> to vector<2x4x20xf32>
    %178 = arith.addf %174, %177 : vector<2x4x20xf32>
    %c0_67 = arith.constant 0 : index
    %c0_68 = arith.constant 0 : index
    %c0_69 = arith.constant 0 : index
    %179 = vector.load %arg3[%c0_67, %c0_68, %c0_69] : memref<8x20x10xf32, #tpu.memory_space<vmem>>, vector<1x20x10xf32>
    %180 = vector.shape_cast %179 : vector<1x20x10xf32> to vector<20x10xf32>
    %181 = vector.shape_cast %180 : vector<20x10xf32> to vector<1x20x10xf32>
    %182 = vector.broadcast %181 : vector<1x20x10xf32> to vector<2x20x10xf32>
    %c2_70 = arith.constant 2 : index
    %c0_71 = arith.constant 0 : index
    %c0_72 = arith.constant 0 : index
    %183 = vector.load %arg3[%c2_70, %c0_71, %c0_72] : memref<8x20x10xf32, #tpu.memory_space<vmem>>, vector<1x20x10xf32>
    %184 = vector.shape_cast %183 : vector<1x20x10xf32> to vector<20x10xf32>
    %185 = vector.shape_cast %184 : vector<20x10xf32> to vector<1x20x10xf32>
    %186 = vector.broadcast %185 : vector<1x20x10xf32> to vector<2x20x10xf32>
    %c4_73 = arith.constant 4 : index
    %c0_74 = arith.constant 0 : index
    %c0_75 = arith.constant 0 : index
    %187 = vector.load %arg3[%c4_73, %c0_74, %c0_75] : memref<8x20x10xf32, #tpu.memory_space<vmem>>, vector<1x20x10xf32>
    %188 = vector.shape_cast %187 : vector<1x20x10xf32> to vector<20x10xf32>
    %189 = vector.shape_cast %188 : vector<20x10xf32> to vector<1x20x10xf32>
    %190 = vector.broadcast %189 : vector<1x20x10xf32> to vector<2x20x10xf32>
    "tpu.trace_start"() <{level = 10 : i32, message = "bsf,bfd->bsd"}> : () -> ()
    %cst_76 = arith.constant dense<0.000000e+00> : vector<2x4x10xf32>
    %191 = tpu.matmul %178, %182, %cst_76 {dimension_numbers = #tpu.dot_dimension_numbers<[2], [1], [1], [2], [0, 0, 0, 1, 1, 2], [0], [0]>} : vector<2x4x20xf32>, vector<2x20x10xf32>, vector<2x4x10xf32> -> vector<2x4x10xf32>
    %cst_77 = arith.constant dense<0.000000e+00> : vector<2x4x10xf32>
    %192 = tpu.matmul %178, %186, %cst_77 {dimension_numbers = #tpu.dot_dimension_numbers<[2], [1], [1], [2], [0, 0, 0, 1, 1, 2], [0], [0]>} : vector<2x4x20xf32>, vector<2x20x10xf32>, vector<2x4x10xf32> -> vector<2x4x10xf32>
    %cst_78 = arith.constant dense<0.000000e+00> : vector<2x4x10xf32>
    %193 = tpu.matmul %178, %190, %cst_78 {dimension_numbers = #tpu.dot_dimension_numbers<[2], [1], [1], [2], [0, 0, 0, 1, 1, 2], [0], [0]>} : vector<2x4x20xf32>, vector<2x20x10xf32>, vector<2x4x10xf32> -> vector<2x4x10xf32>
    "tpu.trace_stop"() : () -> ()
    "tpu.trace_start"() <{level = 10 : i32, message = "bqd,bkd->bqk"}> : () -> ()
    %cst_79 = arith.constant dense<0.000000e+00> : vector<2x4x4xf32>
    %194 = tpu.matmul %191, %192, %cst_79 {dimension_numbers = #tpu.dot_dimension_numbers<[2], [2], [1], [1], [0, 0, 0, 1, 1, 1], [0], [0]>} : vector<2x4x10xf32>, vector<2x4x10xf32>, vector<2x4x4xf32> -> vector<2x4x4xf32>
    "tpu.trace_stop"() : () -> ()
    %cst_80 = arith.constant 0.316227764 : f32
    %195 = vector.broadcast %cst_80 : f32 to vector<2x4x4xf32>
    %196 = arith.mulf %194, %195 : vector<2x4x4xf32>
    %cst_81 = arith.constant dense<0xFF800000> : vector<2x4xf32>
    %197 = vector.multi_reduction <maximumf>, %196, %cst_81 [2] : vector<2x4x4xf32> to vector<2x4xf32>
    %198 = vector.shape_cast %197 : vector<2x4xf32> to vector<2x4x1xf32>
    %199 = vector.broadcast %198 : vector<2x4x1xf32> to vector<2x4x4xf32>
    %200 = arith.subf %196, %199 : vector<2x4x4xf32>
    %201 = math.exp %200 : vector<2x4x4xf32>
    %cst_82 = arith.constant dense<0.000000e+00> : vector<2x4xf32>
    %202 = vector.multi_reduction <add>, %201, %cst_82 [2] : vector<2x4x4xf32> to vector<2x4xf32>
    %203 = vector.shape_cast %202 : vector<2x4xf32> to vector<2x4x1xf32>
    %204 = tpu.reciprocal %203 {approx = true} : vector<2x4x1xf32> -> vector<2x4x1xf32>
    %205 = vector.broadcast %204 : vector<2x4x1xf32> to vector<2x4x4xf32>
    %206 = arith.mulf %201, %205 : vector<2x4x4xf32>
    "tpu.trace_start"() <{level = 10 : i32, message = "bqk,bkd->bqd"}> : () -> ()
    %cst_83 = arith.constant dense<0.000000e+00> : vector<2x4x10xf32>
    %207 = tpu.matmul %206, %193, %cst_83 {dimension_numbers = #tpu.dot_dimension_numbers<[2], [1], [1], [2], [0, 0, 0, 1, 1, 2], [0], [0]>} : vector<2x4x4xf32>, vector<2x4x10xf32>, vector<2x4x10xf32> -> vector<2x4x10xf32>
    "tpu.trace_stop"() : () -> ()
    %c6_84 = arith.constant 6 : index
    %c0_85 = arith.constant 0 : index
    %c0_86 = arith.constant 0 : index
    %208 = vector.load %arg3[%c6_84, %c0_85, %c0_86] : memref<8x20x10xf32, #tpu.memory_space<vmem>>, vector<1x20x10xf32>
    %209 = vector.shape_cast %208 : vector<1x20x10xf32> to vector<20x10xf32>
    %210 = vector.shape_cast %209 : vector<20x10xf32> to vector<1x20x10xf32>
    %211 = vector.broadcast %210 : vector<1x20x10xf32> to vector<2x20x10xf32>
    "tpu.trace_start"() <{level = 10 : i32, message = "bsd,bfd->bsf"}> : () -> ()
    %cst_87 = arith.constant dense<0.000000e+00> : vector<2x4x20xf32>
    %212 = tpu.matmul %207, %211, %cst_87 {dimension_numbers = #tpu.dot_dimension_numbers<[2], [2], [1], [1], [0, 0, 0, 1, 1, 1], [0], [0]>} : vector<2x4x10xf32>, vector<2x20x10xf32>, vector<2x4x20xf32> -> vector<2x4x20xf32>
    "tpu.trace_stop"() : () -> ()
    %c1_88 = arith.constant 1 : index
    %c0_89 = arith.constant 0 : index
    %c0_90 = arith.constant 0 : index
    %213 = vector.load %arg3[%c1_88, %c0_89, %c0_90] : memref<8x20x10xf32, #tpu.memory_space<vmem>>, vector<1x20x10xf32>
    %214 = vector.shape_cast %213 : vector<1x20x10xf32> to vector<20x10xf32>
    %215 = vector.shape_cast %214 : vector<20x10xf32> to vector<1x20x10xf32>
    %216 = vector.broadcast %215 : vector<1x20x10xf32> to vector<2x20x10xf32>
    %c3_91 = arith.constant 3 : index
    %c0_92 = arith.constant 0 : index
    %c0_93 = arith.constant 0 : index
    %217 = vector.load %arg3[%c3_91, %c0_92, %c0_93] : memref<8x20x10xf32, #tpu.memory_space<vmem>>, vector<1x20x10xf32>
    %218 = vector.shape_cast %217 : vector<1x20x10xf32> to vector<20x10xf32>
    %219 = vector.shape_cast %218 : vector<20x10xf32> to vector<1x20x10xf32>
    %220 = vector.broadcast %219 : vector<1x20x10xf32> to vector<2x20x10xf32>
    %c5_94 = arith.constant 5 : index
    %c0_95 = arith.constant 0 : index
    %c0_96 = arith.constant 0 : index
    %221 = vector.load %arg3[%c5_94, %c0_95, %c0_96] : memref<8x20x10xf32, #tpu.memory_space<vmem>>, vector<1x20x10xf32>
    %222 = vector.shape_cast %221 : vector<1x20x10xf32> to vector<20x10xf32>
    %223 = vector.shape_cast %222 : vector<20x10xf32> to vector<1x20x10xf32>
    %224 = vector.broadcast %223 : vector<1x20x10xf32> to vector<2x20x10xf32>
    "tpu.trace_start"() <{level = 10 : i32, message = "bsf,bfd->bsd"}> : () -> ()
    %cst_97 = arith.constant dense<0.000000e+00> : vector<2x4x10xf32>
    %225 = tpu.matmul %178, %216, %cst_97 {dimension_numbers = #tpu.dot_dimension_numbers<[2], [1], [1], [2], [0, 0, 0, 1, 1, 2], [0], [0]>} : vector<2x4x20xf32>, vector<2x20x10xf32>, vector<2x4x10xf32> -> vector<2x4x10xf32>
    %cst_98 = arith.constant dense<0.000000e+00> : vector<2x4x10xf32>
    %226 = tpu.matmul %178, %220, %cst_98 {dimension_numbers = #tpu.dot_dimension_numbers<[2], [1], [1], [2], [0, 0, 0, 1, 1, 2], [0], [0]>} : vector<2x4x20xf32>, vector<2x20x10xf32>, vector<2x4x10xf32> -> vector<2x4x10xf32>
    %cst_99 = arith.constant dense<0.000000e+00> : vector<2x4x10xf32>
    %227 = tpu.matmul %178, %224, %cst_99 {dimension_numbers = #tpu.dot_dimension_numbers<[2], [1], [1], [2], [0, 0, 0, 1, 1, 2], [0], [0]>} : vector<2x4x20xf32>, vector<2x20x10xf32>, vector<2x4x10xf32> -> vector<2x4x10xf32>
    "tpu.trace_stop"() : () -> ()
    "tpu.trace_start"() <{level = 10 : i32, message = "bqd,bkd->bqk"}> : () -> ()
    %cst_100 = arith.constant dense<0.000000e+00> : vector<2x4x4xf32>
    %228 = tpu.matmul %225, %226, %cst_100 {dimension_numbers = #tpu.dot_dimension_numbers<[2], [2], [1], [1], [0, 0, 0, 1, 1, 1], [0], [0]>} : vector<2x4x10xf32>, vector<2x4x10xf32>, vector<2x4x4xf32> -> vector<2x4x4xf32>
    "tpu.trace_stop"() : () -> ()
    %cst_101 = arith.constant 0.316227764 : f32
    %229 = vector.broadcast %cst_101 : f32 to vector<2x4x4xf32>
    %230 = arith.mulf %228, %229 : vector<2x4x4xf32>
    %cst_102 = arith.constant dense<0xFF800000> : vector<2x4xf32>
    %231 = vector.multi_reduction <maximumf>, %230, %cst_102 [2] : vector<2x4x4xf32> to vector<2x4xf32>
    %232 = vector.shape_cast %231 : vector<2x4xf32> to vector<2x4x1xf32>
    %233 = vector.broadcast %232 : vector<2x4x1xf32> to vector<2x4x4xf32>
    %234 = arith.subf %230, %233 : vector<2x4x4xf32>
    %235 = math.exp %234 : vector<2x4x4xf32>
    %cst_103 = arith.constant dense<0.000000e+00> : vector<2x4xf32>
    %236 = vector.multi_reduction <add>, %235, %cst_103 [2] : vector<2x4x4xf32> to vector<2x4xf32>
    %237 = vector.shape_cast %236 : vector<2x4xf32> to vector<2x4x1xf32>
    %238 = tpu.reciprocal %237 {approx = true} : vector<2x4x1xf32> -> vector<2x4x1xf32>
    %239 = vector.broadcast %238 : vector<2x4x1xf32> to vector<2x4x4xf32>
    %240 = arith.mulf %235, %239 : vector<2x4x4xf32>
    "tpu.trace_start"() <{level = 10 : i32, message = "bqk,bkd->bqd"}> : () -> ()
    %cst_104 = arith.constant dense<0.000000e+00> : vector<2x4x10xf32>
    %241 = tpu.matmul %240, %227, %cst_104 {dimension_numbers = #tpu.dot_dimension_numbers<[2], [1], [1], [2], [0, 0, 0, 1, 1, 2], [0], [0]>} : vector<2x4x4xf32>, vector<2x4x10xf32>, vector<2x4x10xf32> -> vector<2x4x10xf32>
    "tpu.trace_stop"() : () -> ()
    %c7_105 = arith.constant 7 : index
    %c0_106 = arith.constant 0 : index
    %c0_107 = arith.constant 0 : index
    %242 = vector.load %arg3[%c7_105, %c0_106, %c0_107] : memref<8x20x10xf32, #tpu.memory_space<vmem>>, vector<1x20x10xf32>
    %243 = vector.shape_cast %242 : vector<1x20x10xf32> to vector<20x10xf32>
    %244 = vector.shape_cast %243 : vector<20x10xf32> to vector<1x20x10xf32>
    %245 = vector.broadcast %244 : vector<1x20x10xf32> to vector<2x20x10xf32>
    "tpu.trace_start"() <{level = 10 : i32, message = "bsd,bfd->bsf"}> : () -> ()
    %cst_108 = arith.constant dense<0.000000e+00> : vector<2x4x20xf32>
    %246 = tpu.matmul %241, %245, %cst_108 {dimension_numbers = #tpu.dot_dimension_numbers<[2], [2], [1], [1], [0, 0, 0, 1, 1, 1], [0], [0]>} : vector<2x4x10xf32>, vector<2x20x10xf32>, vector<2x4x20xf32> -> vector<2x4x20xf32>
    "tpu.trace_stop"() : () -> ()
    %247 = arith.addf %212, %246 : vector<2x4x20xf32>
    %248 = arith.addf %178, %247 : vector<2x4x20xf32>
    %cst_109 = arith.constant 1.000000e+00 : f32
    %249 = vector.broadcast %cst_109 : f32 to vector<2x1x4xf32>
    "tpu.trace_start"() <{level = 10 : i32, message = "bos,bsf->bof"}> : () -> ()
    %cst_110 = arith.constant dense<0.000000e+00> : vector<2x1x20xf32>
    %250 = tpu.matmul %249, %248, %cst_110 {dimension_numbers = #tpu.dot_dimension_numbers<[2], [1], [1], [2], [0, 0, 0, 1, 1, 2], [0], [0]>} : vector<2x1x4xf32>, vector<2x4x20xf32>, vector<2x1x20xf32> -> vector<2x1x20xf32>
    "tpu.trace_stop"() : () -> ()
    %cst_111 = arith.constant dense<0.000000e+00> : vector<2x1xf32>
    %251 = vector.multi_reduction <add>, %250, %cst_111 [2] : vector<2x1x20xf32> to vector<2x1xf32>
    %252 = vector.shape_cast %251 : vector<2x1xf32> to vector<2x1x1xf32>
    %cst_112 = arith.constant 1.250000e-02 : f32
    %253 = vector.broadcast %cst_112 : f32 to vector<2x1x1xf32>
    %254 = arith.mulf %252, %253 : vector<2x1x1xf32>
    %255 = vector.broadcast %254 : vector<2x1x1xf32> to vector<2x4x20xf32>
    %256 = arith.subf %248, %255 : vector<2x4x20xf32>
    %257 = arith.mulf %256, %256 : vector<2x4x20xf32>
    "tpu.trace_start"() <{level = 10 : i32, message = "bos,bsf->bof"}> : () -> ()
    %cst_113 = arith.constant dense<0.000000e+00> : vector<2x1x20xf32>
    %258 = tpu.matmul %249, %257, %cst_113 {dimension_numbers = #tpu.dot_dimension_numbers<[2], [1], [1], [2], [0, 0, 0, 1, 1, 2], [0], [0]>} : vector<2x1x4xf32>, vector<2x4x20xf32>, vector<2x1x20xf32> -> vector<2x1x20xf32>
    "tpu.trace_stop"() : () -> ()
    %cst_114 = arith.constant dense<0.000000e+00> : vector<2x1xf32>
    %259 = vector.multi_reduction <add>, %258, %cst_114 [2] : vector<2x1x20xf32> to vector<2x1xf32>
    %260 = vector.shape_cast %259 : vector<2x1xf32> to vector<2x1x1xf32>
    %cst_115 = arith.constant 0.0126582282 : f32
    %261 = vector.broadcast %cst_115 : f32 to vector<2x1x1xf32>
    %262 = arith.mulf %260, %261 : vector<2x1x1xf32>
    %263 = math.sqrt %262 : vector<2x1x1xf32>
    %cst_116 = arith.constant 9.99999997E-7 : f32
    %264 = vector.broadcast %cst_116 : f32 to vector<2x1x1xf32>
    %265 = arith.addf %263, %264 : vector<2x1x1xf32>
    %266 = vector.broadcast %265 : vector<2x1x1xf32> to vector<2x4x20xf32>
    %267 = arith.divf %256, %266 : vector<2x4x20xf32>
    "tpu.trace_start"() <{level = 10 : i32, message = "bos,bsf->bof"}> : () -> ()
    %cst_117 = arith.constant dense<0.000000e+00> : vector<2x1x20xf32>
    %268 = tpu.matmul %249, %267, %cst_117 {dimension_numbers = #tpu.dot_dimension_numbers<[2], [1], [1], [2], [0, 0, 0, 1, 1, 2], [0], [0]>} : vector<2x1x4xf32>, vector<2x4x20xf32>, vector<2x1x20xf32> -> vector<2x1x20xf32>
    "tpu.trace_stop"() : () -> ()
    %cst_118 = arith.constant 2.500000e-01 : f32
    %269 = vector.broadcast %cst_118 : f32 to vector<2x1x20xf32>
    %270 = arith.mulf %268, %269 : vector<2x1x20xf32>
    %c0_119 = arith.constant 0 : index
    %c0_120 = arith.constant 0 : index
    %271 = vector.load %arg4[%c0_119, %c0_120] : memref<20x40xf32, #tpu.memory_space<vmem>>, vector<20x40xf32>
    %272 = vector.shape_cast %271 : vector<20x40xf32> to vector<1x20x40xf32>
    %273 = vector.broadcast %272 : vector<1x20x40xf32> to vector<2x20x40xf32>
    "tpu.trace_start"() <{level = 10 : i32, message = "bof,bfk->bok"}> : () -> ()
    %cst_121 = arith.constant dense<0.000000e+00> : vector<2x1x40xf32>
    %274 = tpu.matmul %270, %273, %cst_121 {dimension_numbers = #tpu.dot_dimension_numbers<[2], [1], [1], [2], [0, 0, 0, 1, 1, 2], [0], [0]>} : vector<2x1x20xf32>, vector<2x20x40xf32>, vector<2x1x40xf32> -> vector<2x1x40xf32>
    "tpu.trace_stop"() : () -> ()
    %c1_122 = arith.constant 1 : index
    %c0_123 = arith.constant 0 : index
    %275 = vector.load %arg5[%c1_122, %c0_123] : memref<4x40xf32, #tpu.memory_space<vmem>>, vector<1x40xf32>
    %276 = vector.shape_cast %275 : vector<1x40xf32> to vector<1x1x40xf32>
    %277 = vector.broadcast %276 : vector<1x1x40xf32> to vector<2x1x40xf32>
    %278 = arith.addf %274, %277 : vector<2x1x40xf32>
    %279 = math.tanh %278 : vector<2x1x40xf32>
    %c3_124 = arith.constant 3 : index
    %c0_125 = arith.constant 0 : index
    %280 = vector.load %arg5[%c3_124, %c0_125] : memref<4x40xf32, #tpu.memory_space<vmem>>, vector<1x40xf32>
    %281 = vector.shape_cast %280 : vector<1x40xf32> to vector<1x1x40xf32>
    %282 = vector.broadcast %281 : vector<1x1x40xf32> to vector<2x1x40xf32>
    %283 = arith.mulf %279, %282 : vector<2x1x40xf32>
    %cst_126 = arith.constant dense<0.000000e+00> : vector<2x1xf32>
    %284 = vector.multi_reduction <add>, %283, %cst_126 [2] : vector<2x1x40xf32> to vector<2x1xf32>
    %285 = vector.shape_cast %284 : vector<2x1xf32> to vector<2x1x1xf32>
    %c2_127 = arith.constant 2 : index
    %c0_128 = arith.constant 0 : index
    %286 = vector.load %arg5[%c2_127, %c0_128] : memref<4x40xf32, #tpu.memory_space<vmem>>, vector<1x1xf32>
    %287 = vector.shape_cast %286 : vector<1x1xf32> to vector<1x1x1xf32>
    %288 = vector.broadcast %287 : vector<1x1x1xf32> to vector<2x1x1xf32>
    %289 = arith.addf %285, %288 : vector<2x1x1xf32>
    %c0_129 = arith.constant 0 : index
    %c0_130 = arith.constant 0 : index
    %c0_131 = arith.constant 0 : index
    %290 = vector.load %arg6[%c0_129, %c0_130, %c0_131] : memref<2x1x1xf32, #tpu.memory_space<vmem>>, vector<2x1x1xf32>
    tpu.vector_store %arg6[%c0_129, %c0_130, %c0_131], %289 {strides = array<i32>} : memref<2x1x1xf32, #tpu.memory_space<vmem>>, vector<2x1x1xf32>,
    return
  }
}

</mosaic_0001>

<bundles_post_ra>
// kernel: image_attention_forward.1
= control target key start
LH: loop header
LB: loop body
LE: loop exit
PB: predicated region body
PF: predicated region fallthrough
CT: control target
= control target key end

     0   :  { %s4366_s25 = smov 127   ;;  %s4367_s28 = smov 126   ;;  %v4377_v49 = vmov 0.0   ;;  %vm505_vm0 = vcmask 1043456   ;;  %vm4382_vm1 = vmmov 0   ;;  %vm501_vm2 = vcmask 818176   ;;  %s5173_s1 = inlined_call_operand.vmem [shape: f32[3,10], index: 1, kind: input, shape index: {}]   ;;  %s5174_s0 = inlined_call_operand.vmem [shape: f32[1,2,4,128], index: 0, kind: input, shape index: {}]   ;;  %s5175_s2 = inlined_call_operand.vmem [shape: f32[3,100,20], index: 2, kind: input, shape index: {}]   ;;  %s5176_s3 = inlined_call_operand.vmem [shape: f32[8,20,10], index: 3, kind: input, shape index: {}]   ;;  %s5177_s5 = inlined_call_operand.vmem [shape: f32[4,40], index: 5, kind: input, shape index: {}]   ;;  %s5178_s4 = inlined_call_operand.vmem [shape: f32[20,40], index: 4, kind: input, shape index: {}]   ;;  %s5179_s6 = inlined_call_operand.vmem [shape: f32[2,1,1], index: 6, kind: output, shape index: {}]  }
   0x1   :  { %v39_v0 = vld [vmem:[%s5173_s1 + $0x2] sm:$0x1]  ;;  %v25_v1 = vld [vmem:[%s5173_s1] sm:$0x1]  ;;  %v32_v2 = vld [vmem:[%s5173_s1 + $0x1] sm:$0x1]  ;;  %3842 = vmatprep.subr.mxu0 %v4377_v49  ;;  %3871 = vmatprep.subr.mxu1 %v4377_v49 }
   0x2   :  { %80 = vrot.lane.b32.xlu1 %v39_v0, %s4366_s25  ;;  %46 = vrot.lane.b32.xlu0 %v25_v1, %s4366_s25  ;;  %4248 = vpush %v25_v1  ;;  %s4368_s29 = smov 125   ;;  %s4369_s30 = smov 124   ;;  %v476_v3 = vld [vmem:[%s5173_s1 + $0x1] sm:$0x1]  ;;  %v801_v4 = vld [vmem:[%s5173_s1 + $0x2] sm:$0x1] }
   0x3   :  { %4250 = vpush %v32_v2  ;;  %s4370_s7 = smov 123   ;;  %s4371_s8 = smov 122   ;;  %v4451_v32 = vld [vmem:[%s5174_s0] sm:$0xf]  ;;  %v4456_v33 = vld [vmem:[%s5174_s0 + $0x4] sm:$0xf]  ;;  %3868 = vmatprep.mubr.msk.f32.mxu0 %vm4382_vm1, %v4377_v49  ;;  %3897 = vmatprep.mubr.msk.f32.mxu1 %vm4382_vm1, %v4377_v49 }
   0x4   :  { %4252 = vpush %v39_v0  ;;  %s4372_s9 = smov 121   ;;  %s4373_s10 = smov 120   ;;  %v3538_v50 = vld [vmem:[%s5175_s2 + $0xc8] sm:$0xf]  ;;  %v3537_v51 = vld [vmem:[%s5175_s2 + $0xc0] sm:$0xff]  ;;  %v3536_v52 = vld [vmem:[%s5175_s2 + $0xb8] sm:$0xff] }
   0x5   :  { %s4374_s13 = smov 119   ;;  %s5180_s21 = smov 116   ;;  %3843 = vmatpush3.msk.msra.mxu0 %vm505_vm0, %v3538_v50  ;;  %3872 = vmatpush3.msk.msra.mxu1 %vm505_vm0, %v3538_v50  ;;  %v3535_v56 = vld [vmem:[%s5175_s2 + $0xb0] sm:$0xff]  ;;  %v3534_v57 = vld [vmem:[%s5175_s2 + $0xa8] sm:$0xff]  ;;  %v3533_v61 = vld [vmem:[%s5175_s2 + $0xa0] sm:$0xff]  ;;  %vm995_vm3 = vcmask 162816  }
   0x6   :  { %97 = vrot.lane.b32.xlu1 %v25_v1, %s4367_s28  ;;  %63 = vrot.lane.b32.xlu0 %v32_v2, %s4366_s25  ;;  %v3532_v62 = vld [vmem:[%s5175_s2 + $0x98] sm:$0xff]  ;;  %v3531_v63 = vld [vmem:[%s5175_s2 + $0x90] sm:$0xff]  ;;  %vm1431_vm4 = vcmask 80896   ;;  %vm1586_vm5 = vcmask 27648   ;;  %vm1609_vm6 = vcmask 31744   ;;  %vm3000_vm7 = vcmask 155648  }
   0x7   :  { %3844 = vmatprep.subr.mxu0 %v4377_v49  ;;  %3873 = vmatprep.subr.mxu1 %v4377_v49  ;;  %vm3509_vm12 = vcmask 319488   ;;  %vm3519_vm13 = vcmask 0  }
   0x8   :  { %3845 = vmatpush3.msra.mxu0 %v3537_v51  ;;  %3874 = vmatpush3.msra.mxu1 %v3537_v51 }
   0x9   :  { %3846 = vmatprep.subr.mxu0 %v4377_v49  ;;  %3875 = vmatprep.subr.mxu1 %v4377_v49 }
   0xa   :  { %131 = vrot.lane.b32.xlu1 %v39_v0, %s4367_s28  ;;  %114 = vrot.lane.b32.xlu0 %v32_v2, %s4367_s28 }
   0xb   :  { %3847 = vmatpush3.msra.mxu0 %v3536_v52  ;;  %3876 = vmatpush3.msra.mxu1 %v3536_v52 }
   0xc   :  { %3848 = vmatprep.subr.mxu0 %v4377_v49  ;;  %3877 = vmatprep.subr.mxu1 %v4377_v49 }
   0xd   :  { %3849 = vmatpush3.msra.mxu0 %v3535_v56  ;;  %3878 = vmatpush3.msra.mxu1 %v3535_v56 }
   0xe   :  { %165 = vrot.lane.b32.xlu1 %v32_v2, %s4368_s29  ;;  %148 = vrot.lane.b32.xlu0 %v25_v1, %s4368_s29 }
   0xf   :  { %3850 = vmatprep.subr.mxu0 %v4377_v49  ;;  %3879 = vmatprep.subr.mxu1 %v4377_v49 }
  0x10   :  { %3851 = vmatpush3.msra.mxu0 %v3534_v57  ;;  %3880 = vmatpush3.msra.mxu1 %v3534_v57 }
  0x11   :  { %3852 = vmatprep.subr.mxu0 %v4377_v49  ;;  %3881 = vmatprep.subr.mxu1 %v4377_v49 }
  0x12   :  { %199 = vrot.lane.b32.xlu1 %v25_v1, %s4369_s30  ;;  %182 = vrot.lane.b32.xlu0 %v39_v0, %s4368_s29 }
  0x13   :  { %3853 = vmatpush3.msra.mxu0 %v3533_v61  ;;  %3882 = vmatpush3.msra.mxu1 %v3533_v61 }
  0x14   :  { %3854 = vmatprep.subr.mxu0 %v4377_v49  ;;  %3883 = vmatprep.subr.mxu1 %v4377_v49 }
  0x15   :  { %3855 = vmatpush3.msra.mxu0 %v3532_v62  ;;  %3884 = vmatpush3.msra.mxu1 %v3532_v62 }
  0x16   :  { %233 = vrot.lane.b32.xlu1 %v39_v0, %s4369_s30  ;;  %216 = vrot.lane.b32.xlu0 %v32_v2, %s4369_s30 }
  0x17   :  { %3856 = vmatprep.subr.mxu0 %v4377_v49  ;;  %3885 = vmatprep.subr.mxu1 %v4377_v49 }
  0x18   :  { %3857 = vmatpush3.msra.mxu0 %v3531_v63  ;;  %3886 = vmatpush3.msra.mxu1 %v3531_v63 }
  0x19   :  { %3858 = vmatprep.subr.mxu0 %v4377_v49  ;;  %3887 = vmatprep.subr.mxu1 %v4377_v49 }
  0x1a   :  { %267 = vrot.lane.b32.xlu1 %v32_v2, %s4370_s7  ;;  %250 = vrot.lane.b32.xlu0 %v25_v1, %s4370_s7 }
  0x1e   :  { %301 = vrot.lane.b32.xlu1 %v25_v1, %s4371_s8  ;;  %284 = vrot.lane.b32.xlu0 %v39_v0, %s4370_s7 }
  0x22   :  { %335 = vrot.lane.b32.xlu1 %v39_v0, %s4371_s8  ;;  %318 = vrot.lane.b32.xlu0 %v32_v2, %s4371_s8  ;;  %s5186_s8 = smov 118  }
  0x26   :  { %369 = vrot.lane.b32.xlu1 %v32_v2, %s4372_s9  ;;  %352 = vrot.lane.b32.xlu0 %v25_v1, %s4372_s9 }
  0x2a   :  { %386 = vrot.lane.b32.xlu0 %v39_v0, %s4372_s9  ;;  %403 = vrot.lane.b32.xlu1 %v25_v1, %s4373_s10 }
  0x2e   :  { %420 = vrot.lane.b32.xlu0 %v32_v2, %s4373_s10  ;;  %437 = vrot.lane.b32.xlu1 %v39_v0, %s4373_s10 }
  0x32   :  { %478 = vrot.lane.b32.xlu1 %v476_v3, %s4374_s13  ;;  %454 = vrot.lane.b32.xlu0 %v25_v1, %s4374_s13  ;;  %v3530_v3 = vld [vmem:[%s5175_s2 + $0x88] sm:$0xff] }
  0x33   :  { %s4440_s1 = spop %4248  ;;  %3859 = vmatpush3.msra.mxu0 %v3530_v3  ;;  %3888 = vmatpush3.msra.mxu1 %v3530_v3 }
  0x34   :  { %s4442_s16 = spop %4250  ;;  %3860 = vmatprep.subr.mxu0 %v4377_v49  ;;  %3889 = vmatprep.subr.mxu1 %v4377_v49 }
  0x35   :  { %s4444_s17 = spop %4252  ;;  %v35_v3 = vstv %s4442_s16 }
  0x36   :  { %803 = vrot.lane.b32.xlu0 %v801_v4, %s4374_s13  ;;  %s5184_s13 = smov 117  }
  0x74   :  { %v81_v5 = vpop.permute.xlu1 %80  ;;  %v47_v6 = vpop.permute.xlu0 %46 }
  0x75   :  { %4254 = vpush %v47_v6 }
  0x78   :  { %v98_v7 = vpop.permute.xlu1 %97  ;;  %v64_v8 = vpop.permute.xlu0 %63 }
  0x79   :  { %4256 = vpush %v64_v8 }
  0x7a   :  { %4258 = vpush %v81_v5  ;;  %v3529_v5 = vld [vmem:[%s5175_s2 + $0x80] sm:$0xff] }
  0x7b   :  { %4260 = vpush %v98_v7  ;;  %3861 = vmatpush3.msra.mxu0 %v3529_v5  ;;  %3890 = vmatpush3.msra.mxu1 %v3529_v5  ;;  %v38_v5 = vmul.f32 %v35_v3, %v4456_v33 }
  0x7c   :  { %v132_v9 = vpop.permute.xlu1 %131  ;;  %v115_v10 = vpop.permute.xlu0 %114  ;;  %3862 = vmatprep.subr.mxu0 %v4377_v49  ;;  %3891 = vmatprep.subr.mxu1 %v4377_v49 }
  0x7d   :  { %4262 = vpush %v115_v10 }
  0x7e   :  { %4264 = vpush %v132_v9  ;;  %v3528_v9 = vld [vmem:[%s5175_s2 + $0x78] sm:$0xff] }
  0x7f   :  { %3863 = vmatpush3.msra.mxu0 %v3528_v9  ;;  %3892 = vmatpush3.msra.mxu1 %v3528_v9 }
  0x80   :  { %v166_v11 = vpop.permute.xlu1 %165  ;;  %v149_v12 = vpop.permute.xlu0 %148  ;;  %3864 = vmatprep.subr.mxu0 %v4377_v49  ;;  %3893 = vmatprep.subr.mxu1 %v4377_v49 }
  0x81   :  { %4266 = vpush %v149_v12  ;;  %v3527_v12 = vld [vmem:[%s5175_s2 + $0x70] sm:$0xff] }
  0x82   :  { %4268 = vpush %v166_v11  ;;  %3865 = vmatpush3.msra.mxu0 %v3527_v12  ;;  %3894 = vmatpush3.msra.mxu1 %v3527_v12 }
  0x83   :  { %3866 = vmatprep.subr.mxu0 %v4377_v49  ;;  %3895 = vmatprep.subr.mxu1 %v4377_v49 }
  0x84   :  { %v200_v13 = vpop.permute.xlu1 %199  ;;  %v183_v14 = vpop.permute.xlu0 %182 }
  0x85   :  { %4270 = vpush %v183_v14  ;;  %v3526_v14 = vld [vmem:[%s5175_s2 + $0x68] sm:$0xff] }
  0x86   :  { %4272 = vpush %v200_v13  ;;  %3867 = vmatpush3.msra.mxu0 %v3526_v14  ;;  %3896 = vmatpush3.msra.mxu1 %v3526_v14 }
  0x87   :  { %3900 = vmatprep.subr.mxu0 %v4377_v49  ;;  %3929 = vmatprep.subr.mxu1 %v4377_v49 }
  0x88   :  { %v234_v15 = vpop.permute.xlu1 %233  ;;  %v217_v16 = vpop.permute.xlu0 %216 }
  0x89   :  { %4274 = vpush %v217_v16 }
  0x8a   :  { %4276 = vpush %v234_v15 }
  0x8c   :  { %v268_v17 = vpop.permute.xlu1 %267  ;;  %v251_v18 = vpop.permute.xlu0 %250 }
  0x8d   :  { %4278 = vpush %v251_v18 }
  0x8e   :  { %4280 = vpush %v268_v17 }
  0x90   :  { %v302_v19 = vpop.permute.xlu1 %301  ;;  %v285_v20 = vpop.permute.xlu0 %284 }
  0x91   :  { %4282 = vpush %v285_v20 }
  0x92   :  { %4284 = vpush %v302_v19 }
  0x94   :  { %v336_v21 = vpop.permute.xlu1 %335  ;;  %v319_v22 = vpop.permute.xlu0 %318 }
  0x95   :  { %4286 = vpush %v319_v22 }
  0x96   :  { %4288 = vpush %v336_v21 }
  0x98   :  { %v370_v23 = vpop.permute.xlu1 %369  ;;  %v353_v24 = vpop.permute.xlu0 %352 }
  0x99   :  { %4290 = vpush %v353_v24 }
  0x9a   :  { %4292 = vpush %v370_v23 }
  0x9c   :  { %v387_v25 = vpop.permute.xlu0 %386  ;;  %v404_v26 = vpop.permute.xlu1 %403 }
  0x9d   :  { %4294 = vpush %v387_v25 }
  0x9e   :  { %4296 = vpush %v404_v26 }
  0xa0   :  { %v421_v27 = vpop.permute.xlu0 %420  ;;  %v438_v28 = vpop.permute.xlu1 %437 }
  0xa1   :  { %4298 = vpush %v421_v27 }
  0xa2   :  { %4300 = vpush %v438_v28 }
  0xa4   :  { %v479_v29 = vpop.permute.xlu1 %478  ;;  %v455_v30 = vpop.permute.xlu0 %454 }
  0xa5   :  { %4302 = vpush %v455_v30 }
  0xa6   :  { %4304 = vpush %v479_v29  ;;  %s4446_s18 = spop %4254 }
  0xa7   :  { %v49_v4 = vstv %s4446_s18  ;;  %s5190_s18 = smov 116  }
  0xa8   :  { %v804_v31 = vpop.permute.xlu0 %803  ;;  %v51_v6 = vmul.f32 %v49_v4, %v4451_v32  ;;  %v52_v7 = vmul.f32 %v49_v4, %v4456_v33  ;;  %v37_v4 = vmul.f32 %v35_v3, %v4451_v32 }
  0xa9   :  { %4306 = vpush %v804_v31 }
  0xaa   :  { %s4257_s19 = spop %4256 }
  0xab   :  { %v66_v34 = vstv %s4257_s19  ;;  %s4458_s24 = spop %4258 }
  0xac   :  { %v68_v35 = vmul.f32 %v66_v34, %v4451_v32  ;;  %v69_v36 = vmul.f32 %v66_v34, %v4456_v33  ;;  %s4462_s26 = spop %4260  ;;  %v83_v34 = vstv %s4458_s24 }
  0xad   :  { %v100_v8 = vstv %s4462_s26 }
  0xae   :  { %s4263_s27 = spop %4262  ;;  %74 = vrot.lane.b32.xlu1 %v69_v36, %s4366_s25  ;;  %72 = vrot.lane.b32.xlu0 %v68_v35, %s4366_s25  ;;  %v102_v10 = vmul.f32 %v100_v8, %v4451_v32  ;;  %v103_v11 = vmul.f32 %v100_v8, %v4456_v33  ;;  %v85_v35 = vmul.f32 %v83_v34, %v4451_v32 }
  0xaf   :  { %v117_v37 = vstv %s4263_s27  ;;  %s4468_s0 = spop %4264  ;;  %v86_v36 = vmul.f32 %v83_v34, %v4456_v33 }
  0xb0   :  { %v119_v38 = vmul.f32 %v117_v37, %v4451_v32  ;;  %v120_v39 = vmul.f32 %v117_v37, %v4456_v33  ;;  %v134_v37 = vstv %s4468_s0 }
  0xb2   :  { %s4470_s29 = spop %4266  ;;  %125 = vrot.lane.b32.xlu1 %v120_v39, %s4367_s28  ;;  %123 = vrot.lane.b32.xlu0 %v119_v38, %s4367_s28  ;;  %v136_v38 = vmul.f32 %v134_v37, %v4451_v32  ;;  %v137_v39 = vmul.f32 %v134_v37, %v4456_v33 }
  0xb3   :  { %s4269_s30 = spop %4268  ;;  %v151_v13 = vstv %s4470_s29  ;;  %s5188_s29 = smov 118  }
  0xb4   :  { %v168_v40 = vstv %s4269_s30  ;;  %s5182_s30 = smov 108   ;;  %v153_v15 = vmul.f32 %v151_v13, %v4451_v32  ;;  %v154_v16 = vmul.f32 %v151_v13, %v4456_v33 }
  0xb5   :  { %v170_v41 = vmul.f32 %v168_v40, %v4451_v32  ;;  %v171_v42 = vmul.f32 %v168_v40, %v4456_v33 }
  0xb6   :  { %s4476_s7 = spop %4270 }
  0xb7   :  { %176 = vrot.lane.b32.xlu1 %v171_v42, %s5186_s8  ;;  %174 = vrot.lane.b32.xlu0 %v170_v41, %s5186_s8  ;;  %s4480_s9 = spop %4272  ;;  %v185_v40 = vstv %s4476_s7 }
  0xb8   :  { %v202_v17 = vstv %s4480_s9  ;;  %s5189_s9 = smov 117   ;;  %v187_v41 = vmul.f32 %v185_v40, %v4451_v32  ;;  %v188_v42 = vmul.f32 %v185_v40, %v4456_v33 }
  0xb9   :  { %v204_v18 = vmul.f32 %v202_v17, %v4451_v32  ;;  %v205_v19 = vmul.f32 %v202_v17, %v4456_v33 }
  0xba   :  { %s4275_s10 = spop %4274 }
  0xbb   :  { %v219_v43 = vstv %s4275_s10  ;;  %s4484_s11 = spop %4276 }
  0xbc   :  { %v221_v44 = vmul.f32 %v219_v43, %v4451_v32  ;;  %v222_v45 = vmul.f32 %v219_v43, %v4456_v33  ;;  %v236_v43 = vstv %s4484_s11 }
  0xbe   :  { %s4486_s12 = spop %4278  ;;  %227 = vrot.lane.b32.xlu1 %v222_v45, %s5184_s13  ;;  %225 = vrot.lane.b32.xlu0 %v221_v44, %s5184_s13  ;;  %v238_v44 = vmul.f32 %v236_v43, %v4451_v32  ;;  %v239_v45 = vmul.f32 %v236_v43, %v4456_v33 }
  0xbf   :  { %s4281_s14 = spop %4280  ;;  %v253_v20 = vstv %s4486_s12  ;;  %s5191_s12 = smov 108  }
  0xc0   :  { %v270_v46 = vstv %s4281_s14  ;;  %v255_v21 = vmul.f32 %v253_v20, %v4451_v32  ;;  %v256_v22 = vmul.f32 %v253_v20, %v4456_v33 }
  0xc1   :  { %v272_v47 = vmul.f32 %v270_v46, %v4451_v32  ;;  %v273_v48 = vmul.f32 %v270_v46, %v4456_v33 }
  0xc2   :  { %s4497_s20 = spop %4282 }
  0xc3   :  { %278 = vrot.lane.b32.xlu1 %v273_v48, %s5180_s21  ;;  %276 = vrot.lane.b32.xlu0 %v272_v47, %s5180_s21  ;;  %s4504_s27 = spop %4284  ;;  %v287_v46 = vstv %s4497_s20 }
  0xc4   :  { %v304_v23 = vstv %s4504_s27  ;;  %v289_v47 = vmul.f32 %v287_v46, %v4451_v32  ;;  %v290_v48 = vmul.f32 %v287_v46, %v4456_v33  ;;  %v475_v46 = vld [vmem:[%s5175_s2 + $0x60] sm:$0xf] }
  0xc5   :  { %v306_v24 = vmul.f32 %v304_v23, %v4451_v32  ;;  %v307_v25 = vmul.f32 %v304_v23, %v4456_v33 }
  0xc6   :  { %s4287_s14 = spop %4286 }
  0xc7   :  { %v321_v53 = vstv %s4287_s14  ;;  %s4517_s15 = spop %4288 }
  0xc8   :  { %v323_v54 = vmul.f32 %v321_v53, %v4451_v32  ;;  %v324_v55 = vmul.f32 %v321_v53, %v4456_v33  ;;  %v338_v50 = vstv %s4517_s15 }
  0xc9   :  { %v340_v51 = vmul.f32 %v338_v50, %v4451_v32  ;;  %v341_v52 = vmul.f32 %v338_v50, %v4456_v33 }
  0xca   :  { %s4524_s23 = spop %4290  ;;  %329 = vrot.lane.b32.xlu1 %v324_v55, %s5182_s30  ;;  %327 = vrot.lane.b32.xlu0 %v323_v54, %s5182_s30 }
  0xcb   :  { %s4293_s21 = spop %4292  ;;  %v355_v26 = vstv %s4524_s23 }
  0xcc   :  { %v372_v58 = vstv %s4293_s21  ;;  %s4380_s21 = smov 107   ;;  %v357_v27 = vmul.f32 %v355_v26, %v4451_v32  ;;  %v358_v28 = vmul.f32 %v355_v26, %v4456_v33 }
  0xcd   :  { %v374_v59 = vmul.f32 %v372_v58, %v4451_v32  ;;  %v375_v60 = vmul.f32 %v372_v58, %v4456_v33 }
  0xce   :  { %s4540_s10 = spop %4294 }
  0xcf   :  { %380 = vrot.lane.b32.xlu1 %v375_v60, %s4380_s21  ;;  %378 = vrot.lane.b32.xlu0 %v374_v59, %s4380_s21  ;;  %s4547_s13 = spop %4296  ;;  %v389_v53 = vstv %s4540_s10 }
  0xd0   :  { %v406_v29 = vstv %s4547_s13  ;;  %v391_v55 = vmul.f32 %v389_v53, %v4451_v32  ;;  %v392_v56 = vmul.f32 %v389_v53, %v4456_v33 }
  0xd1   :  { %v408_v30 = vmul.f32 %v406_v29, %v4451_v32  ;;  %v409_v31 = vmul.f32 %v406_v29, %v4456_v33 }
  0xd2   :  { %s4299_s8 = spop %4298 }
  0xd3   :  { %v423_v0 = vstv %s4299_s8  ;;  %s4381_s8 = smov 106  }
  0xd4   :  { %v425_v1 = vmul.f32 %v423_v0, %v4451_v32  ;;  %v426_v2 = vmul.f32 %v423_v0, %v4456_v33 }
  0xd6   :  { %431 = vrot.lane.b32.xlu1 %v426_v2, %s4381_s8  ;;  %429 = vrot.lane.b32.xlu0 %v425_v1, %s4381_s8 }
  0xda   :  { %57 = vrot.lane.b32.xlu0 %v52_v7, %s4366_s25  ;;  %55 = vrot.lane.b32.xlu1 %v51_v6, %s4366_s25 }
  0xde   :  { %108 = vrot.lane.b32.xlu0 %v103_v11, %s4367_s28  ;;  %106 = vrot.lane.b32.xlu1 %v102_v10, %s4367_s28 }
  0xe2   :  { %159 = vrot.lane.b32.xlu0 %v154_v16, %s5188_s29  ;;  %157 = vrot.lane.b32.xlu1 %v153_v15, %s5188_s29 }
  0xe6   :  { %210 = vrot.lane.b32.xlu0 %v205_v19, %s5189_s9  ;;  %208 = vrot.lane.b32.xlu1 %v204_v18, %s5189_s9 }
  0xea   :  { %261 = vrot.lane.b32.xlu0 %v256_v22, %s5190_s18  ;;  %259 = vrot.lane.b32.xlu1 %v255_v21, %s5190_s18 }
  0xee   :  { %312 = vrot.lane.b32.xlu0 %v307_v25, %s5191_s12  ;;  %310 = vrot.lane.b32.xlu1 %v306_v24, %s5191_s12 }
  0xf2   :  { %363 = vrot.lane.b32.xlu0 %v358_v28, %s4380_s21  ;;  %361 = vrot.lane.b32.xlu1 %v357_v27, %s4380_s21 }
  0xf6   :  { %414 = vrot.lane.b32.xlu0 %v409_v31, %s4381_s8  ;;  %412 = vrot.lane.b32.xlu1 %v408_v30, %s4381_s8 }
  0xfa   :  { %91 = vrot.lane.b32.xlu0 %v86_v36, %s4366_s25  ;;  %89 = vrot.lane.b32.xlu1 %v85_v35, %s4366_s25  ;;  %s4301_s25 = spop %4300 }
  0xfb   :  { %v440_v54 = vstv %s4301_s25 }
  0xfc   :  { %v442_v57 = vmul.f32 %v440_v54, %v4451_v32  ;;  %v443_v58 = vmul.f32 %v440_v54, %v4456_v33 }
  0xfe   :  { %142 = vrot.lane.b32.xlu0 %v137_v39, %s4367_s28  ;;  %140 = vrot.lane.b32.xlu1 %v136_v38, %s4367_s28  ;;  %s4673_s28 = spop %4302 }
  0xff   :  { %s4305_s16 = spop %4304 }
 0x100   :  { %v481_v28 = vstv %s4305_s16  ;;  %s4307_s26 = spop %4306 }
 0x102   :  { %193 = vrot.lane.b32.xlu0 %v188_v42, %s5188_s29  ;;  %191 = vrot.lane.b32.xlu1 %v187_v41, %s5188_s29  ;;  %v28_v41 = vstv %s4440_s1 }
 0x106   :  { %244 = vrot.lane.b32.xlu0 %v239_v45, %s5189_s9  ;;  %242 = vrot.lane.b32.xlu1 %v238_v44, %s5189_s9  ;;  %v30_v44 = vmul.f32 %v28_v41, %v4451_v32  ;;  %v31_v45 = vmul.f32 %v28_v41, %v4456_v33 }
 0x10a   :  { %295 = vrot.lane.b32.xlu0 %v290_v48, %s5190_s18  ;;  %293 = vrot.lane.b32.xlu1 %v289_v47, %s5190_s18 }
 0x10e   :  { %346 = vrot.lane.b32.xlu0 %v341_v52, %s5191_s12  ;;  %344 = vrot.lane.b32.xlu1 %v340_v51, %s5191_s12  ;;  %v474_v52 = vld [vmem:[%s5175_s2 + $0x58] sm:$0xff] }
 0x112   :  { %397 = vrot.lane.b32.xlu0 %v392_v56, %s4380_s21  ;;  %395 = vrot.lane.b32.xlu1 %v391_v55, %s4380_s21 }
 0x116   :  { %448 = vrot.lane.b32.xlu0 %v443_v58, %s4381_s8  ;;  %446 = vrot.lane.b32.xlu1 %v442_v57, %s4381_s8  ;;  %v473_v57 = vld [vmem:[%s5175_s2 + $0x50] sm:$0xff] }
 0x120   :  { %v75_v59 = vpop.permute.xlu1 %74  ;;  %v73_v60 = vpop.permute.xlu0 %72 }
 0x121   :  { %v79_v8 = vadd.f32 %v75_v59, %v38_v5  ;;  %v78_v9 = vadd.f32 %v73_v60, %v37_v4  ;;  %v472_v60 = vld [vmem:[%s5175_s2 + $0x48] sm:$0xff]  ;;  %v470_v4 = vld [vmem:[%s5175_s2 + $0x38] sm:$0xff] }
 0x124   :  { %v126_v61 = vpop.permute.xlu1 %125  ;;  %v124_v62 = vpop.permute.xlu0 %123 }
 0x125   :  { %v130_v10 = vadd.f32 %v126_v61, %v79_v8  ;;  %v129_v11 = vadd.f32 %v124_v62, %v78_v9  ;;  %v469_v9 = vld [vmem:[%s5175_s2 + $0x30] sm:$0xff] }
 0x129   :  { %v177_v63 = vpop.permute.xlu1 %176  ;;  %v175_v0 = vpop.permute.xlu0 %174 }
 0x12a   :  { %v181_v14 = vadd.f32 %v177_v63, %v130_v10  ;;  %v180_v15 = vadd.f32 %v175_v0, %v129_v11 }
 0x130   :  { %v228_v1 = vpop.permute.xlu1 %227  ;;  %v226_v2 = vpop.permute.xlu0 %225 }
 0x131   :  { %v232_v16 = vadd.f32 %v228_v1, %v181_v14  ;;  %v231_v17 = vadd.f32 %v226_v2, %v180_v15  ;;  %v471_v1 = vld [vmem:[%s5175_s2 + $0x40] sm:$0xff] }
 0x135   :  { %v279_v6 = vpop.permute.xlu1 %278  ;;  %v277_v7 = vpop.permute.xlu0 %276 }
 0x136   :  { %v283_v18 = vadd.f32 %v279_v6, %v232_v16  ;;  %v282_v19 = vadd.f32 %v277_v7, %v231_v17  ;;  %v467_v17 = vld [vmem:[%s5175_s2 + $0x20] sm:$0xff] }
 0x13c   :  { %v330_v12 = vpop.permute.xlu1 %329  ;;  %v328_v13 = vpop.permute.xlu0 %327 }
 0x13d   :  { %v334_v22 = vadd.f32 %v330_v12, %v283_v18  ;;  %v333_v23 = vadd.f32 %v328_v13, %v282_v19  ;;  %v468_v12 = vld [vmem:[%s5175_s2 + $0x28] sm:$0xff]  ;;  %v457_v18 = vstv %s4673_s28 }
 0x141   :  { %v381_v20 = vpop.permute.xlu1 %380  ;;  %v379_v21 = vpop.permute.xlu0 %378 }
 0x142   :  { %v385_v24 = vadd.f32 %v381_v20, %v334_v22  ;;  %v384_v25 = vadd.f32 %v379_v21, %v333_v23  ;;  %v466_v21 = vld [vmem:[%s5175_s2 + $0x18] sm:$0xff] }
 0x148   :  { %v432_v26 = vpop.permute.xlu1 %431  ;;  %v430_v27 = vpop.permute.xlu0 %429 }
 0x149   :  { %v436_v29 = vadd.f32 %v432_v26, %v385_v24  ;;  %v435_v30 = vadd.f32 %v430_v27, %v384_v25  ;;  %v465_v24 = vld [vmem:[%s5175_s2 + $0x10] sm:$0xff]  ;;  %v464_v25 = vld [vmem:[%s5175_s2 + $0x8] sm:$0xff] }
 0x14b   :  { %v483_v31 = vadd.f32 %v481_v28, %v435_v30  ;;  %v484_v34 = vadd.f32 %v481_v28, %v436_v29  ;;  %v463_v28 = vld [vmem:[%s5175_s2] sm:$0xff] }
 0x14c   :  { %v58_v35 = vpop.permute.xlu0 %57  ;;  %v56_v36 = vpop.permute.xlu1 %55 }
 0x14d   :  { %4326 = vtanh.f32 %v483_v31  ;;  %v62_v50 = vadd.f32 %v58_v35, %v31_v45  ;;  %v61_v51 = vadd.f32 %v56_v36, %v30_v44  ;;  %v42_v31 = vstv %s4444_s17 }
 0x14e   :  { %4328 = vtanh.f32 %v484_v34  ;;  %v44_v36 = vmul.f32 %v42_v31, %v4451_v32 }
 0x150   :  { %v109_v37 = vpop.permute.xlu0 %108  ;;  %v107_v38 = vpop.permute.xlu1 %106 }
 0x151   :  { %v113_v55 = vadd.f32 %v109_v37, %v62_v50  ;;  %v112_v56 = vadd.f32 %v107_v38, %v61_v51  ;;  %v45_v37 = vmul.f32 %v42_v31, %v4456_v33  ;;  %v3559_v38 = vld [vmem:[%s5175_s2 + $0x130] sm:$0xf]  ;;  %v3556_v50 = vld [vmem:[%s5175_s2 + $0x118] sm:$0xff] }
 0x154   :  { %v160_v39 = vpop.permute.xlu0 %159  ;;  %v158_v40 = vpop.permute.xlu1 %157 }
 0x155   :  { %v164_v58 = vadd.f32 %v160_v39, %v113_v55  ;;  %v163_v59 = vadd.f32 %v158_v40, %v112_v56  ;;  %v3555_v55 = vld [vmem:[%s5175_s2 + $0x110] sm:$0xff] }
 0x158   :  { %v211_v42 = vpop.permute.xlu0 %210  ;;  %v209_v43 = vpop.permute.xlu1 %208 }
 0x159   :  { %v215_v63 = vadd.f32 %v211_v42, %v164_v58  ;;  %v214_v0 = vadd.f32 %v209_v43, %v163_v59  ;;  %v3558_v43 = vld [vmem:[%s5175_s2 + $0x128] sm:$0xff] }
 0x15a   :  { %v4327_v47 = vpop.eup %4326  ;;  %v3554_v58 = vld [vmem:[%s5175_s2 + $0x108] sm:$0xff] }
 0x15b   :  { %v4329_v48 = vpop.eup %4328  ;;  %3869 = vmatmul.mubr.msk.f32.vlgmr.msra.gmra.mxu0 %vm501_vm2, %v4327_v47 }
 0x15c   :  { %3898 = vmatmul.mubr.msk.f32.vlgmr.msra.gmra.mxu1 %vm501_vm2, %v4329_v48  ;;  %v262_v53 = vpop.permute.xlu0 %261  ;;  %v260_v54 = vpop.permute.xlu1 %259  ;;  %3901 = vmatpush3.msk.msra.mxu0 %vm505_vm0, %v475_v46 }
 0x15d   :  { %3930 = vmatpush3.msk.msra.mxu1 %vm505_vm0, %v475_v46  ;;  %3902 = vmatprep.subr.mxu0 %v4377_v49  ;;  %v266_v2 = vadd.f32 %v262_v53, %v215_v63  ;;  %v265_v3 = vadd.f32 %v260_v54, %v214_v0  ;;  %v3557_v46 = vld [vmem:[%s5175_s2 + $0x120] sm:$0xff] }
 0x15e   :  { %3931 = vmatprep.subr.mxu1 %v4377_v49  ;;  %3903 = vmatpush3.msra.mxu0 %v474_v52  ;;  %v3553_v63 = vld [vmem:[%s5175_s2 + $0x100] sm:$0xff] }
 0x15f   :  { %3932 = vmatpush3.msra.mxu1 %v474_v52  ;;  %3904 = vmatprep.subr.mxu0 %v4377_v49 }
 0x160   :  { %v313_v61 = vpop.permute.xlu0 %312  ;;  %v311_v62 = vpop.permute.xlu1 %310  ;;  %3933 = vmatprep.subr.mxu1 %v4377_v49  ;;  %3905 = vmatpush3.msra.mxu0 %v473_v57 }
 0x161   :  { %3934 = vmatpush3.msra.mxu1 %v473_v57  ;;  %3906 = vmatprep.subr.mxu0 %v4377_v49  ;;  %v317_v7 = vadd.f32 %v313_v61, %v266_v2  ;;  %v316_v8 = vadd.f32 %v311_v62, %v265_v3  ;;  %v3552_v2 = vld [vmem:[%s5175_s2 + $0xf8] sm:$0xff] }
 0x162   :  { %3935 = vmatprep.subr.mxu1 %v4377_v49  ;;  %3907 = vmatpush3.msra.mxu0 %v472_v60 }
 0x163   :  { %3936 = vmatpush3.msra.mxu1 %v472_v60  ;;  %3908 = vmatprep.subr.mxu0 %v4377_v49 }
 0x164   :  { %v364_v5 = vpop.permute.xlu0 %363  ;;  %v362_v6 = vpop.permute.xlu1 %361  ;;  %3937 = vmatprep.subr.mxu1 %v4377_v49  ;;  %3909 = vmatpush3.msra.mxu0 %v471_v1 }
 0x165   :  { %3938 = vmatpush3.msra.mxu1 %v471_v1  ;;  %3910 = vmatprep.subr.mxu0 %v4377_v49  ;;  %v368_v10 = vadd.f32 %v364_v5, %v317_v7  ;;  %v367_v11 = vadd.f32 %v362_v6, %v316_v8  ;;  %v3551_v7 = vld [vmem:[%s5175_s2 + $0xf0] sm:$0xff]  ;;  %v806_v8 = vstv %s4307_s26 }
 0x166   :  { %3939 = vmatprep.subr.mxu1 %v4377_v49  ;;  %3911 = vmatpush3.msra.mxu0 %v470_v4 }
 0x167   :  { %3940 = vmatpush3.msra.mxu1 %v470_v4  ;;  %3912 = vmatprep.subr.mxu0 %v4377_v49 }
 0x168   :  { %v415_v13 = vpop.permute.xlu0 %414  ;;  %v413_v14 = vpop.permute.xlu1 %412  ;;  %3941 = vmatprep.subr.mxu1 %v4377_v49  ;;  %3913 = vmatpush3.msra.mxu0 %v469_v9 }
 0x169   :  { %v419_v15 = vadd.f32 %v415_v13, %v368_v10  ;;  %v418_v16 = vadd.f32 %v413_v14, %v367_v11  ;;  %3942 = vmatpush3.msra.mxu1 %v469_v9  ;;  %3914 = vmatprep.subr.mxu0 %v4377_v49  ;;  %v3550_v11 = vld [vmem:[%s5175_s2 + $0xe8] sm:$0xff]  ;;  %v3548_v13 = vld [vmem:[%s5175_s2 + $0xd8] sm:$0xff]  ;;  %v3547_v14 = vld [vmem:[%s5175_s2 + $0xd0] sm:$0xff] }
 0x16a   :  { %3943 = vmatprep.subr.mxu1 %v4377_v49  ;;  %3915 = vmatpush3.msra.mxu0 %v468_v12 }
 0x16b   :  { %v460_v19 = vadd.f32 %v457_v18, %v419_v15  ;;  %v459_v20 = vadd.f32 %v457_v18, %v418_v16  ;;  %3944 = vmatpush3.msra.mxu1 %v468_v12  ;;  %3916 = vmatprep.subr.mxu0 %v4377_v49  ;;  %v3549_v12 = vld [vmem:[%s5175_s2 + $0xe0] sm:$0xff]  ;;  %v985_v18 = vld [vmem:[%s5176_s3 + $0x8] sm:$0xff] }
 0x16c   :  { %v92_v22 = vpop.permute.xlu0 %91  ;;  %v90_v23 = vpop.permute.xlu1 %89  ;;  %3945 = vmatprep.subr.mxu1 %v4377_v49  ;;  %3917 = vmatpush3.msra.mxu0 %v467_v17 }
 0x16d   :  { %4330 = vtanh.f32 %v460_v19  ;;  %3946 = vmatpush3.msra.mxu1 %v467_v17  ;;  %3918 = vmatprep.subr.mxu0 %v4377_v49  ;;  %v96_v41 = vadd.f32 %v92_v22, %v45_v37  ;;  %v95_v42 = vadd.f32 %v90_v23, %v44_v36  ;;  %v986_v17 = vld [vmem:[%s5176_s3 + $0x10] sm:$0xf]  ;;  %v984_v19 = vld [vmem:[%s5176_s3] sm:$0xff] }
 0x16e   :  { %4332 = vtanh.f32 %v459_v20  ;;  %3947 = vmatprep.subr.mxu1 %v4377_v49  ;;  %3919 = vmatpush3.msra.mxu0 %v466_v21 }
 0x16f   :  { %3948 = vmatpush3.msra.mxu1 %v466_v21  ;;  %3920 = vmatprep.subr.mxu0 %v4377_v49 }
 0x170   :  { %v143_v26 = vpop.permute.xlu0 %142  ;;  %v141_v27 = vpop.permute.xlu1 %140  ;;  %3949 = vmatprep.subr.mxu1 %v4377_v49  ;;  %3921 = vmatpush3.msra.mxu0 %v465_v24 }
 0x171   :  { %3950 = vmatpush3.msra.mxu1 %v465_v24  ;;  %3922 = vmatprep.subr.mxu0 %v4377_v49  ;;  %v147_v33 = vadd.f32 %v143_v26, %v96_v41  ;;  %v146_v45 = vadd.f32 %v141_v27, %v95_v42  ;;  %v3566_v42 = vld [vmem:[%s5176_s3 + $0x38] sm:$0xff] }
 0x172   :  { %3951 = vmatprep.subr.mxu1 %v4377_v49  ;;  %3923 = vmatpush3.msra.mxu0 %v464_v25 }
 0x173   :  { %3952 = vmatpush3.msra.mxu1 %v464_v25  ;;  %3924 = vmatprep.subr.mxu0 %v4377_v49 }
 0x174   :  { %v194_v29 = vpop.permute.xlu0 %193  ;;  %v192_v30 = vpop.permute.xlu1 %191  ;;  %3953 = vmatprep.subr.mxu1 %v4377_v49  ;;  %3925 = vmatpush3.msra.mxu0 %v463_v28 }
 0x175   :  { %3926 = vmatprep.mubr.msk.f32.mxu0 %vm4382_vm1, %v4377_v49  ;;  %3954 = vmatpush3.msra.mxu1 %v463_v28  ;;  %v198_v47 = vadd.f32 %v194_v29, %v147_v33  ;;  %v197_v48 = vadd.f32 %v192_v30, %v146_v45  ;;  %v3564_v30 = vld [vmem:[%s5177_s5] ss:$0 sm:$0xff] }
 0x176   :  { %3955 = vmatprep.mubr.msk.f32.mxu1 %vm4382_vm1, %v4377_v49  ;;  %3958 = vmatprep.subr.mxu0 %v4377_v49  ;;  %v3568_v33 = vld [vmem:[%s5176_s3 + $0x60] sm:$0xff] }
 0x177   :  { %3987 = vmatprep.subr.mxu1 %v4377_v49 }
 0x178   :  { %v245_v34 = vpop.permute.xlu0 %244  ;;  %v243_v35 = vpop.permute.xlu1 %242 }
 0x179   :  { %v249_v53 = vadd.f32 %v245_v34, %v198_v47  ;;  %v248_v54 = vadd.f32 %v243_v35, %v197_v48 }
 0x17a   :  { %v4331_v39 = vpop.eup %4330 }
 0x17b   :  { %v4333_v40 = vpop.eup %4332  ;;  %3956 = vmatmul.mubr.msk.f32.vlgmr.msra.gmra.mxu1 %vm501_vm2, %v4331_v39 }
 0x17c   :  { %3927 = vmatmul.mubr.msk.f32.vlgmr.msra.gmra.mxu0 %vm501_vm2, %v4333_v40  ;;  %v296_v44 = vpop.permute.xlu0 %295  ;;  %v294_v32 = vpop.permute.xlu1 %293  ;;  %3988 = vmatpush3.msk.msra.mxu1 %vm505_vm0, %v3559_v38  ;;  %v3567_v40 = vld [vmem:[%s5176_s3 + $0x40] sm:$0xf] }
 0x17d   :  { %3959 = vmatpush3.msk.msra.mxu0 %vm505_vm0, %v3559_v38  ;;  %3989 = vmatprep.subr.mxu1 %v4377_v49  ;;  %v300_v56 = vadd.f32 %v296_v44, %v249_v53  ;;  %v299_v57 = vadd.f32 %v294_v32, %v248_v54  ;;  %v3570_v44 = vld [vmem:[%s5176_s3 + $0x70] sm:$0xf]  ;;  %v3569_v32 = vld [vmem:[%s5176_s3 + $0x68] sm:$0xff] }
 0x17e   :  { %3960 = vmatprep.subr.mxu0 %v4377_v49  ;;  %3990 = vmatpush3.msra.mxu1 %v3558_v43 }
 0x17f   :  { %3961 = vmatpush3.msra.mxu0 %v3558_v43  ;;  %3991 = vmatprep.subr.mxu1 %v4377_v49  ;;  %v3565_v43 = vld [vmem:[%s5176_s3 + $0x30] sm:$0xff] }
 0x180   :  { %v347_v51 = vpop.permute.xlu0 %346  ;;  %v345_v52 = vpop.permute.xlu1 %344  ;;  %3962 = vmatprep.subr.mxu0 %v4377_v49  ;;  %3992 = vmatpush3.msra.mxu1 %v3557_v46 }
 0x181   :  { %3963 = vmatpush3.msra.mxu0 %v3557_v46  ;;  %3993 = vmatprep.subr.mxu1 %v4377_v49  ;;  %v351_v61 = vadd.f32 %v347_v51, %v300_v56  ;;  %v350_v62 = vadd.f32 %v345_v52, %v299_v57 }
 0x182   :  { %3964 = vmatprep.subr.mxu0 %v4377_v49  ;;  %3994 = vmatpush3.msra.mxu1 %v3556_v50 }
 0x183   :  { %3965 = vmatpush3.msra.mxu0 %v3556_v50  ;;  %3995 = vmatprep.subr.mxu1 %v4377_v49 }
 0x184   :  { %v398_v59 = vpop.permute.xlu0 %397  ;;  %v396_v60 = vpop.permute.xlu1 %395  ;;  %3966 = vmatprep.subr.mxu0 %v4377_v49  ;;  %3996 = vmatpush3.msra.mxu1 %v3555_v55 }
 0x185   :  { %3967 = vmatpush3.msra.mxu0 %v3555_v55  ;;  %3997 = vmatprep.subr.mxu1 %v4377_v49  ;;  %v402_v0 = vadd.f32 %v398_v59, %v351_v61  ;;  %v401_v1 = vadd.f32 %v396_v60, %v350_v62 }
 0x186   :  { %3968 = vmatprep.subr.mxu0 %v4377_v49  ;;  %3998 = vmatpush3.msra.mxu1 %v3554_v58 }
 0x187   :  { %3969 = vmatpush3.msra.mxu0 %v3554_v58  ;;  %3999 = vmatprep.subr.mxu1 %v4377_v49 }
 0x188   :  { %v449_v3 = vpop.permute.xlu0 %448  ;;  %v447_v4 = vpop.permute.xlu1 %446  ;;  %3970 = vmatprep.subr.mxu0 %v4377_v49  ;;  %4000 = vmatpush3.msra.mxu1 %v3553_v63 }
 0x189   :  { %v453_v5 = vadd.f32 %v449_v3, %v402_v0  ;;  %v452_v6 = vadd.f32 %v447_v4, %v401_v1  ;;  %3971 = vmatpush3.msra.mxu0 %v3553_v63  ;;  %4001 = vmatprep.subr.mxu1 %v4377_v49 }
 0x18a   :  { %3972 = vmatprep.subr.mxu0 %v4377_v49  ;;  %4002 = vmatpush3.msra.mxu1 %v3552_v2 }
 0x18b   :  { %v809_v9 = vadd.f32 %v806_v8, %v453_v5  ;;  %v808_v10 = vadd.f32 %v806_v8, %v452_v6  ;;  %3973 = vmatpush3.msra.mxu0 %v3552_v2  ;;  %4003 = vmatprep.subr.mxu1 %v4377_v49 }
 0x18c   :  { %3974 = vmatprep.subr.mxu0 %v4377_v49  ;;  %4004 = vmatpush3.msra.mxu1 %v3551_v7 }
 0x18d   :  { %4334 = vtanh.f32 %v809_v9  ;;  %3975 = vmatpush3.msra.mxu0 %v3551_v7  ;;  %4005 = vmatprep.subr.mxu1 %v4377_v49 }
 0x18e   :  { %4336 = vtanh.f32 %v808_v10  ;;  %3976 = vmatprep.subr.mxu0 %v4377_v49  ;;  %4006 = vmatpush3.msra.mxu1 %v3550_v11 }
 0x18f   :  { %3977 = vmatpush3.msra.mxu0 %v3550_v11  ;;  %4007 = vmatprep.subr.mxu1 %v4377_v49 }
 0x190   :  { %3978 = vmatprep.subr.mxu0 %v4377_v49  ;;  %4008 = vmatpush3.msra.mxu1 %v3549_v12 }
 0x191   :  { %3979 = vmatpush3.msra.mxu0 %v3549_v12  ;;  %4009 = vmatprep.subr.mxu1 %v4377_v49 }
 0x192   :  { %3980 = vmatprep.subr.mxu0 %v4377_v49  ;;  %4010 = vmatpush3.msra.mxu1 %v3548_v13 }
 0x193   :  { %3981 = vmatpush3.msra.mxu0 %v3548_v13  ;;  %4011 = vmatprep.subr.mxu1 %v4377_v49 }
 0x194   :  { %3982 = vmatprep.subr.mxu0 %v4377_v49  ;;  %3984 = vmatprep.mubr.msk.f32.mxu0 %vm4382_vm1, %v4377_v49 }
 0x195   :  { %3983 = vmatpush3.msra.mxu0 %v3547_v14  ;;  %4012 = vmatpush3.msra.mxu1 %v3547_v14 }
 0x196   :  { %4013 = vmatprep.mubr.msk.f32.mxu1 %vm4382_vm1, %v4377_v49  ;;  %4016 = vmatprep.subr.mxu0 %v4377_v49 }
 0x197   :  { %4025 = vmatprep.subr.mxu1 %v4377_v49 }
 0x19a   :  { %v4335_v15 = vpop.eup %4334 }
 0x19b   :  { %v4337_v16 = vpop.eup %4336  ;;  %4014 = vmatmul.mubr.msk.f32.vlgmr.msra.gmra.mxu1 %vm501_vm2, %v4335_v15 }
 0x19c   :  { %3985 = vmatmul.mubr.msk.f32.vlgmr.msra.gmra.mxu0 %vm501_vm2, %v4337_v16  ;;  %4031 = vmatprep.mubr.msk.f32.mxu1 %vm4382_vm1, %v4377_v49 }
 0x19d   :  { %4022 = vmatprep.mubr.msk.f32.mxu0 %vm4382_vm1, %v4377_v49  ;;  %4017 = vmatpush3.msk.msra.mxu0 %vm505_vm0, %v986_v17 }
 0x19e   :  { %4026 = vmatpush3.msk.msra.mxu1 %vm505_vm0, %v986_v17  ;;  %4018 = vmatprep.subr.mxu0 %v4377_v49  ;;  %v3596_v17 = vld [vmem:[%s5176_s3 + $0x28] sm:$0xf] }
 0x19f   :  { %4027 = vmatprep.subr.mxu1 %v4377_v49  ;;  %4019 = vmatpush3.msra.mxu0 %v985_v18 }
 0x1a0   :  { %4028 = vmatpush3.msra.mxu1 %v985_v18  ;;  %4020 = vmatprep.subr.mxu0 %v4377_v49 }
 0x1a1   :  { %4029 = vmatprep.subr.mxu1 %v4377_v49  ;;  %4021 = vmatpush3.msra.mxu0 %v984_v19 }
 0x1a2   :  { %4030 = vmatpush3.msra.mxu1 %v984_v19  ;;  %4034 = vmatprep.subr.mxu0 %v4377_v49  ;;  %v3595_v19 = vld [vmem:[%s5176_s3 + $0x20] sm:$0xff] }
 0x1a3   :  { %4043 = vmatprep.subr.mxu1 %v4377_v49 }
 0x21b   :  { %v575_v20 = vpop.f32.mrf.mxu0 }
 0x21c   :  { %v648_v21 = vpop.f32.mrf.mxu1 }
 0x21d   :  { %v3870_v22 = vpop.f32.mrf.mxu0 }
 0x21e   :  { %v3899_v23 = vpop.f32.mrf.mxu1  ;;  %v3598_v22 = vld [vmem:[%s5176_s3 + $0x50] sm:$0xff] }
 0x21f   :  { %v3597_v23 = vld [vmem:[%s5176_s3 + $0x48] sm:$0xff] }
 0x23b   :  { %v797_v24 = vpop.f32.mrf.mxu1 }
 0x23c   :  { %v724_v25 = vpop.f32.mrf.mxu0  ;;  %v798_v28 = vadd.f32 %v797_v24, %v648_v21  ;;  %v3599_v21 = vld [vmem:[%s5176_s3 + $0x58] sm:$0xf]  ;;  %v3602_v24 = vld [vmem:[%s5176_s3 + $0x88] sm:$0xf] }
 0x23d   :  { %v3957_v26 = vpop.f32.mrf.mxu1  ;;  %v725_v29 = vadd.f32 %v724_v25, %v575_v20  ;;  %v3594_v20 = vld [vmem:[%s5176_s3 + $0x18] sm:$0xff]  ;;  %v3601_v25 = vld [vmem:[%s5176_s3 + $0x80] sm:$0xff] }
 0x23e   :  { %v3928_v27 = vpop.f32.mrf.mxu0  ;;  %v3600_v26 = vld [vmem:[%s5176_s3 + $0x78] sm:$0xff] }
 0x25b   :  { %v971_v31 = vpop.f32.mrf.mxu1 }
 0x25c   :  { %v898_v34 = vpop.f32.mrf.mxu0  ;;  %v976_v35 = vadd.f32 %v971_v31, %v798_v28 }
 0x25d   :  { %v975_v36 = vadd.f32 %v898_v34, %v725_v29  ;;  %v4015_v37 = vpop.f32.mrf.mxu1 }
 0x25e   :  { %v4854_v38 = vadd.f32 %v3564_v30, %v976_v35  ;;  %v3986_v39 = vpop.f32.mrf.mxu0 }
 0x25f   :  { %v4859_v41 = vadd.f32 %v3564_v30, %v975_v36 }
 0x260   :  { %4032 = vmatmul.mubr.msk.f32.vlgmr.msra.gmra.mxu1 %vm995_vm3, %v4854_v38 }
 0x261   :  { %4023 = vmatmul.mubr.msk.f32.vlgmr.msra.gmra.mxu0 %vm995_vm3, %v4859_v41  ;;  %4044 = vmatpush3.msk.msra.mxu1 %vm505_vm0, %v3567_v40 }
 0x262   :  { %4035 = vmatpush3.msk.msra.mxu0 %vm505_vm0, %v3567_v40  ;;  %4045 = vmatprep.subr.mxu1 %v4377_v49 }
 0x263   :  { %4036 = vmatprep.subr.mxu0 %v4377_v49  ;;  %4046 = vmatpush3.msra.mxu1 %v3566_v42 }
 0x264   :  { %4037 = vmatpush3.msra.mxu0 %v3566_v42  ;;  %4047 = vmatprep.subr.mxu1 %v4377_v49 }
 0x265   :  { %4038 = vmatprep.subr.mxu0 %v4377_v49  ;;  %4040 = vmatprep.mubr.msk.f32.mxu0 %vm4382_vm1, %v4377_v49 }
 0x266   :  { %4039 = vmatpush3.msra.mxu0 %v3565_v43  ;;  %4048 = vmatpush3.msra.mxu1 %v3565_v43 }
 0x267   :  { %4049 = vmatprep.mubr.msk.f32.mxu1 %vm4382_vm1, %v4377_v49  ;;  %4041 = vmatmul.mubr.msk.f32.vlgmr.msra.gmra.mxu0 %vm995_vm3, %v4859_v41 }
 0x268   :  { %4050 = vmatmul.mubr.msk.f32.vlgmr.msra.gmra.mxu1 %vm995_vm3, %v4854_v38  ;;  %4052 = vmatprep.subr.mxu0 %v4377_v49 }
 0x269   :  { %4061 = vmatprep.subr.mxu1 %v4377_v49  ;;  %4053 = vmatpush3.msk.msra.mxu0 %vm505_vm0, %v3570_v44 }
 0x26a   :  { %4062 = vmatpush3.msk.msra.mxu1 %vm505_vm0, %v3570_v44  ;;  %4054 = vmatprep.subr.mxu0 %v4377_v49 }
 0x26b   :  { %4063 = vmatprep.subr.mxu1 %v4377_v49  ;;  %4055 = vmatpush3.msra.mxu0 %v3569_v32 }
 0x26c   :  { %4064 = vmatpush3.msra.mxu1 %v3569_v32  ;;  %4056 = vmatprep.subr.mxu0 %v4377_v49 }
 0x26d   :  { %4065 = vmatprep.subr.mxu1 %v4377_v49  ;;  %4057 = vmatpush3.msra.mxu0 %v3568_v33 }
 0x26e   :  { %4058 = vmatprep.mubr.msk.f32.mxu0 %vm4382_vm1, %v4377_v49  ;;  %4066 = vmatpush3.msra.mxu1 %v3568_v33 }
 0x26f   :  { %4067 = vmatprep.mubr.msk.f32.mxu1 %vm4382_vm1, %v4377_v49  ;;  %4059 = vmatmul.mubr.msk.f32.vlgmr.msra.gmra.mxu0 %vm995_vm3, %v4859_v41 }
 0x270   :  { %4068 = vmatmul.mubr.msk.f32.vlgmr.msra.gmra.mxu1 %vm995_vm3, %v4854_v38  ;;  %4070 = vmatprep.subr.mxu0 %v4377_v49 }
 0x271   :  { %4075 = vmatprep.subr.mxu1 %v4377_v49  ;;  %4072 = vmatprep.mubr.msk.f32.mxu0 %vm4382_vm1, %v4377_v49 }
 0x272   :  { %4077 = vmatprep.mubr.msk.f32.mxu1 %vm4382_vm1, %v4377_v49 }
 0x320   :  { %v1141_v45 = vpop.f32.mrf.mxu1 }
 0x321   :  { %v1068_v46 = vpop.f32.mrf.mxu0 }
 0x322   :  { %v4033_v47 = vpop.f32.mrf.mxu1 }
 0x323   :  { %v4024_v48 = vpop.f32.mrf.mxu0 }
 0x327   :  { %v1214_v50 = vpop.f32.mrf.mxu0 }
 0x328   :  { %v1284_v51 = vpop.f32.mrf.mxu1  ;;  %4071 = vmatpush3.xpose.msk.msra.mxu0 %vm1431_vm4, %v1214_v50 }
 0x329   :  { %4076 = vmatpush3.xpose.msk.msra.mxu1 %vm1431_vm4, %v1284_v51  ;;  %v4042_v52 = vpop.f32.mrf.mxu0  ;;  %4080 = vmatprep.subr.mxu0 %v4377_v49 }
 0x32a   :  { %v4051_v53 = vpop.f32.mrf.mxu1  ;;  %4085 = vmatprep.subr.mxu1 %v4377_v49 }
 0x32b   :  { %4073 = vmatmul.mubr.msk.f32.vlgmr.msra.gmra.mxu0 %vm1431_vm4, %v1068_v46 }
 0x32c   :  { %4078 = vmatmul.mubr.msk.f32.vlgmr.msra.gmra.mxu1 %vm1431_vm4, %v1141_v45  ;;  %4082 = vmatprep.mubr.msk.f32.mxu0 %vm4382_vm1, %v4377_v49 }
 0x32d   :  { %4087 = vmatprep.mubr.msk.f32.mxu1 %vm4382_vm1, %v4377_v49 }
 0x32f   :  { %v1357_v54 = vpop.f32.mrf.mxu0 }
 0x330   :  { %v1427_v55 = vpop.f32.mrf.mxu1  ;;  %4081 = vmatpush3.msk.msra.mxu0 %vm505_vm0, %v1357_v54 }
 0x331   :  { %4086 = vmatpush3.msk.msra.mxu1 %vm505_vm0, %v1427_v55  ;;  %v4060_v56 = vpop.f32.mrf.mxu0  ;;  %4090 = vmatprep.subr.mxu0 %v4377_v49 }
 0x332   :  { %v4069_v57 = vpop.f32.mrf.mxu1  ;;  %4099 = vmatprep.subr.mxu1 %v4377_v49 }
 0x3eb   :  { %v1504_v58 = vpop.f32.mrf.mxu0 }
 0x3ec   :  { %v1584_v59 = vmul.f32 0.31622776, %v1504_v58  ;;  %v1580_v60 = vpop.f32.mrf.mxu1 }
 0x3ed   :  { %v1585_v61 = vmul.f32 0.31622776, %v1580_v60  ;;  %v4074_v62 = vpop.f32.mrf.mxu0 }
 0x3ee   :  { %v4079_v63 = vpop.f32.mrf.mxu1  ;;  %v1587_v0 = vsel %vm1586_vm5, %v1584_v59, -inf }
 0x3ef   :  { %v1590_v1 = vsel %vm1586_vm5, %v1585_v61, -inf  ;;  %1588 = vmax.xlane.f32.xlu1 %v1587_v0 }
 0x3f0   :  { %1591 = vmax.xlane.f32.xlu0 %v1590_v1 }
 0x478   :  { %v1589_v2 = vpop.xlane.xlu1 %1588 }
 0x479   :  { %v1592_v3 = vpop.xlane.xlu0 %1591  ;;  %v1593_v4 = vsub.f32 %v1584_v59, %v1589_v2 }
 0x47a   :  { %v1594_v5 = vsub.f32 %v1585_v61, %v1592_v3 }
 0x47b   :  { %v1595_v6 = vmul.f32 1.442695, %v1593_v4 }
 0x47c   :  { %v1597_v7 = vmul.f32 1.442695, %v1594_v5  ;;  %v3625_v5 = vld [vmem:[%s5176_s3 + $0xb8] sm:$0xf] }
 0x47d   :  { %4338 = vpow2.f32 %v1595_v6 }
 0x47e   :  { %4340 = vpow2.f32 %v1597_v7  ;;  %v3624_v7 = vld [vmem:[%s5176_s3 + $0xb0] sm:$0xff] }
 0x48a   :  { %v4339_v8 = vpop.eup %4338 }
 0x48b   :  { %v4341_v9 = vpop.eup %4340  ;;  %v1599_v10 = vsel %vm1586_vm5, %v4339_v8, 0.0 }
 0x48c   :  { %v1602_v11 = vsel %vm1586_vm5, %v4341_v9, 0.0  ;;  %1600 = vadd.xlane.f32.xlu0 %v1599_v10 }
 0x48d   :  { %1603 = vadd.xlane.f32.xlu1 %v1602_v11 }
 0x515   :  { %v1601_v12 = vpop.xlane.xlu0 %1600 }
 0x516   :  { %4342 = vrcp.f32 %v1601_v12  ;;  %v1604_v13 = vpop.xlane.xlu1 %1603 }
 0x517   :  { %4344 = vrcp.f32 %v1604_v13 }
 0x523   :  { %v4343_v14 = vpop.eup %4342 }
 0x524   :  { %v4345_v15 = vpop.eup %4344  ;;  %v1607_v16 = vmul.f32 %v4343_v14, %v4339_v8  ;;  %v3623_v8 = vld [vmem:[%s5176_s3 + $0xa8] sm:$0xff]  ;;  %v3592_v14 = vld [vmem:[%s5176_s3 + $0x98] sm:$0xff] }
 0x525   :  { %v1608_v18 = vmul.f32 %v4345_v15, %v4341_v9  ;;  %v3593_v9 = vld [vmem:[%s5176_s3 + $0xa0] sm:$0xf]  ;;  %v3591_v15 = vld [vmem:[%s5176_s3 + $0x90] sm:$0xff] }
 0x526   :  { %4083 = vmatmul.mubr.msk.f32.vlgmr.msra.gmra.mxu0 %vm1609_vm6, %v1607_v16 }
 0x527   :  { %4088 = vmatmul.mubr.msk.f32.vlgmr.msra.gmra.mxu1 %vm1609_vm6, %v1608_v18  ;;  %4091 = vmatpush3.msk.msra.mxu0 %vm505_vm0, %v3596_v17 }
 0x528   :  { %4100 = vmatpush3.msk.msra.mxu1 %vm505_vm0, %v3596_v17  ;;  %4092 = vmatprep.subr.mxu0 %v4377_v49 }
 0x529   :  { %4101 = vmatprep.subr.mxu1 %v4377_v49  ;;  %4093 = vmatpush3.msra.mxu0 %v3595_v19 }
 0x52a   :  { %4102 = vmatpush3.msra.mxu1 %v3595_v19  ;;  %4094 = vmatprep.subr.mxu0 %v4377_v49 }
 0x52b   :  { %4103 = vmatprep.subr.mxu1 %v4377_v49  ;;  %4095 = vmatpush3.msra.mxu0 %v3594_v20 }
 0x52c   :  { %4096 = vmatprep.mubr.msk.f32.mxu0 %vm4382_vm1, %v4377_v49  ;;  %4104 = vmatpush3.msra.mxu1 %v3594_v20 }
 0x52d   :  { %4105 = vmatprep.mubr.msk.f32.mxu1 %vm4382_vm1, %v4377_v49  ;;  %4097 = vmatmul.mubr.msk.f32.vlgmr.msra.gmra.mxu0 %vm995_vm3, %v4859_v41 }
 0x52e   :  { %4106 = vmatmul.mubr.msk.f32.vlgmr.msra.gmra.mxu1 %vm995_vm3, %v4854_v38  ;;  %4108 = vmatprep.subr.mxu0 %v4377_v49 }
 0x52f   :  { %4117 = vmatprep.subr.mxu1 %v4377_v49  ;;  %4109 = vmatpush3.msk.msra.mxu0 %vm505_vm0, %v3599_v21 }
 0x530   :  { %4118 = vmatpush3.msk.msra.mxu1 %vm505_vm0, %v3599_v21  ;;  %4110 = vmatprep.subr.mxu0 %v4377_v49 }
 0x531   :  { %4119 = vmatprep.subr.mxu1 %v4377_v49  ;;  %4111 = vmatpush3.msra.mxu0 %v3598_v22 }
 0x532   :  { %4120 = vmatpush3.msra.mxu1 %v3598_v22  ;;  %4112 = vmatprep.subr.mxu0 %v4377_v49 }
 0x533   :  { %4121 = vmatprep.subr.mxu1 %v4377_v49  ;;  %4113 = vmatpush3.msra.mxu0 %v3597_v23 }
 0x534   :  { %4114 = vmatprep.mubr.msk.f32.mxu0 %vm4382_vm1, %v4377_v49  ;;  %4122 = vmatpush3.msra.mxu1 %v3597_v23 }
 0x535   :  { %4123 = vmatprep.mubr.msk.f32.mxu1 %vm4382_vm1, %v4377_v49  ;;  %4115 = vmatmul.mubr.msk.f32.vlgmr.msra.gmra.mxu0 %vm995_vm3, %v4859_v41 }
 0x536   :  { %4124 = vmatmul.mubr.msk.f32.vlgmr.msra.gmra.mxu1 %vm995_vm3, %v4854_v38  ;;  %4126 = vmatprep.subr.mxu0 %v4377_v49 }
 0x537   :  { %4135 = vmatprep.subr.mxu1 %v4377_v49  ;;  %4127 = vmatpush3.msk.msra.mxu0 %vm505_vm0, %v3602_v24 }
 0x538   :  { %4136 = vmatpush3.msk.msra.mxu1 %vm505_vm0, %v3602_v24  ;;  %4128 = vmatprep.subr.mxu0 %v4377_v49 }
 0x539   :  { %4137 = vmatprep.subr.mxu1 %v4377_v49  ;;  %4129 = vmatpush3.msra.mxu0 %v3601_v25 }
 0x53a   :  { %4138 = vmatpush3.msra.mxu1 %v3601_v25  ;;  %4130 = vmatprep.subr.mxu0 %v4377_v49 }
 0x53b   :  { %4139 = vmatprep.subr.mxu1 %v4377_v49  ;;  %4131 = vmatpush3.msra.mxu0 %v3600_v26 }
 0x53c   :  { %4132 = vmatprep.mubr.msk.f32.mxu0 %vm4382_vm1, %v4377_v49  ;;  %4140 = vmatpush3.msra.mxu1 %v3600_v26 }
 0x53d   :  { %4141 = vmatprep.mubr.msk.f32.mxu1 %vm4382_vm1, %v4377_v49  ;;  %4133 = vmatmul.mubr.msk.f32.vlgmr.msra.gmra.mxu0 %vm995_vm3, %v4859_v41 }
 0x53e   :  { %4142 = vmatmul.mubr.msk.f32.vlgmr.msra.gmra.mxu1 %vm995_vm3, %v4854_v38  ;;  %4144 = vmatprep.subr.mxu0 %v4377_v49 }
 0x53f   :  { %4149 = vmatprep.subr.mxu1 %v4377_v49  ;;  %4146 = vmatprep.mubr.msk.f32.mxu0 %vm4382_vm1, %v4377_v49 }
 0x540   :  { %4151 = vmatprep.mubr.msk.f32.mxu1 %vm4382_vm1, %v4377_v49 }
 0x5e6   :  { %v5015_v27 = vpop.f32.mrf.mxu0 }
 0x5e7   :  { %v5017_v28 = vpop.f32.mrf.mxu1 }
 0x5e8   :  { %v4084_v29 = vpop.f32.mrf.mxu0 }
 0x5e9   :  { %v4089_v30 = vpop.f32.mrf.mxu1 }
 0x5ed   :  { %v1847_v31 = vpop.f32.mrf.mxu0 }
 0x5ee   :  { %v1917_v34 = vpop.f32.mrf.mxu1 }
 0x5ef   :  { %v4098_v35 = vpop.f32.mrf.mxu0 }
 0x5f0   :  { %v4107_v36 = vpop.f32.mrf.mxu1  ;;  %v3009_v35 = vlaneseq }
 0x5f2   :  { %v3010_v36 = vshrl.u32 %v3009_v35, 7  ;;  %v3516_v35 = vld [vmem:[%s5177_s5 + $0x2] sm:$0x1] }
 0x5f5   :  { %v1990_v37 = vpop.f32.mrf.mxu0 }
 0x5f6   :  { %v2060_v39 = vpop.f32.mrf.mxu1  ;;  %4145 = vmatpush3.xpose.msk.msra.mxu0 %vm1431_vm4, %v1990_v37  ;;  %v3011_v37 = vsub.s32 0, %v3010_v36 }
 0x5f7   :  { %4150 = vmatpush3.xpose.msk.msra.mxu1 %vm1431_vm4, %v2060_v39  ;;  %v4116_v40 = vpop.f32.mrf.mxu0  ;;  %4154 = vmatprep.subr.mxu0 %v4377_v49 }
 0x5f8   :  { %v4125_v42 = vpop.f32.mrf.mxu1  ;;  %4159 = vmatprep.subr.mxu1 %v4377_v49 }
 0x5f9   :  { %4147 = vmatmul.mubr.msk.f32.vlgmr.msra.gmra.mxu0 %vm1431_vm4, %v1847_v31 }
 0x5fa   :  { %4152 = vmatmul.mubr.msk.f32.vlgmr.msra.gmra.mxu1 %vm1431_vm4, %v1917_v34  ;;  %4156 = vmatprep.mubr.msk.f32.mxu0 %vm4382_vm1, %v4377_v49 }
 0x5fb   :  { %4161 = vmatprep.mubr.msk.f32.mxu1 %vm4382_vm1, %v4377_v49 }
 0x5fd   :  { %v2133_v43 = vpop.f32.mrf.mxu0 }
 0x5fe   :  { %v2203_v44 = vpop.f32.mrf.mxu1  ;;  %4155 = vmatpush3.msk.msra.mxu0 %vm505_vm0, %v2133_v43 }
 0x5ff   :  { %4160 = vmatpush3.msk.msra.mxu1 %vm505_vm0, %v2203_v44  ;;  %v4134_v32 = vpop.f32.mrf.mxu0  ;;  %4164 = vmatprep.subr.mxu0 %v4377_v49 }
 0x600   :  { %v4143_v33 = vpop.f32.mrf.mxu1  ;;  %4173 = vmatprep.subr.mxu1 %v4377_v49 }
 0x6b9   :  { %v2279_v45 = vpop.f32.mrf.mxu0 }
 0x6ba   :  { %v2359_v46 = vmul.f32 0.31622776, %v2279_v45  ;;  %v2355_v47 = vpop.f32.mrf.mxu1 }
 0x6bb   :  { %v2360_v48 = vmul.f32 0.31622776, %v2355_v47  ;;  %v4148_v50 = vpop.f32.mrf.mxu0 }
 0x6bc   :  { %v4153_v51 = vpop.f32.mrf.mxu1  ;;  %v2361_v52 = vsel %vm1586_vm5, %v2359_v46, -inf }
 0x6bd   :  { %v2364_v53 = vsel %vm1586_vm5, %v2360_v48, -inf  ;;  %2362 = vmax.xlane.f32.xlu0 %v2361_v52 }
 0x6be   :  { %2365 = vmax.xlane.f32.xlu1 %v2364_v53 }
 0x746   :  { %v2363_v54 = vpop.xlane.xlu0 %2362 }
 0x747   :  { %v2366_v55 = vpop.xlane.xlu1 %2365  ;;  %v2367_v56 = vsub.f32 %v2359_v46, %v2363_v54 }
 0x748   :  { %v2368_v57 = vsub.f32 %v2360_v48, %v2366_v55 }
 0x749   :  { %v2369_v58 = vmul.f32 1.442695, %v2367_v56 }
 0x74a   :  { %v2371_v59 = vmul.f32 1.442695, %v2368_v57 }
 0x74b   :  { %4346 = vpow2.f32 %v2369_v58 }
 0x74c   :  { %4348 = vpow2.f32 %v2371_v59 }
 0x758   :  { %v4347_v60 = vpop.eup %4346 }
 0x759   :  { %v4349_v61 = vpop.eup %4348  ;;  %v2373_v62 = vsel %vm1586_vm5, %v4347_v60, 0.0 }
 0x75a   :  { %v2376_v63 = vsel %vm1586_vm5, %v4349_v61, 0.0  ;;  %2374 = vadd.xlane.f32.xlu0 %v2373_v62 }
 0x75b   :  { %2377 = vadd.xlane.f32.xlu1 %v2376_v63 }
 0x7e3   :  { %v2375_v0 = vpop.xlane.xlu0 %2374 }
 0x7e4   :  { %v2378_v1 = vpop.xlane.xlu1 %2377  ;;  %4350 = vrcp.f32 %v2375_v0 }
 0x7e5   :  { %4352 = vrcp.f32 %v2378_v1 }
 0x7f1   :  { %v4351_v2 = vpop.eup %4350 }
 0x7f2   :  { %v4353_v3 = vpop.eup %4352  ;;  %v2381_v4 = vmul.f32 %v4351_v2, %v4347_v60 }
 0x7f3   :  { %v2382_v6 = vmul.f32 %v4353_v3, %v4349_v61 }
 0x7f4   :  { %4157 = vmatmul.mubr.msk.f32.vlgmr.msra.gmra.mxu0 %vm1609_vm6, %v2381_v4 }
 0x7f5   :  { %4162 = vmatmul.mubr.msk.f32.vlgmr.msra.gmra.mxu1 %vm1609_vm6, %v2382_v6  ;;  %4165 = vmatpush3.xpose.msk.msra.mxu0 %vm1431_vm4, %v3625_v5 }
 0x7f6   :  { %4174 = vmatpush3.xpose.msk.msra.mxu1 %vm1431_vm4, %v3625_v5  ;;  %4166 = vmatprep.subr.mxu0 %v4377_v49 }
 0x7f7   :  { %4175 = vmatprep.subr.mxu1 %v4377_v49  ;;  %4170 = vmatprep.mubr.msk.f32.mxu0 %vm4382_vm1, %v4377_v49 }
 0x7f8   :  { %4179 = vmatprep.mubr.msk.f32.mxu1 %vm4382_vm1, %v4377_v49 }
 0x7f9   :  { %4167 = vmatpush3.xpose.msk.msra.mxu0 %vm1431_vm4, %v3624_v7 }
 0x7fa   :  { %4176 = vmatpush3.xpose.msk.msra.mxu1 %vm1431_vm4, %v3624_v7  ;;  %4168 = vmatprep.subr.mxu0 %v4377_v49 }
 0x7fb   :  { %4177 = vmatprep.subr.mxu1 %v4377_v49 }
 0x7fd   :  { %4169 = vmatpush3.xpose.msk.msra.mxu0 %vm1431_vm4, %v3623_v8 }
 0x7fe   :  { %4178 = vmatpush3.xpose.msk.msra.mxu1 %vm1431_vm4, %v3623_v8  ;;  %4182 = vmatprep.subr.mxu0 %v4377_v49 }
 0x7ff   :  { %4191 = vmatprep.subr.mxu1 %v4377_v49 }
 0x8b4   :  { %v2455_v10 = vpop.f32.mrf.mxu0 }
 0x8b5   :  { %v2531_v11 = vpop.f32.mrf.mxu1  ;;  %4171 = vmatmul.mubr.msk.f32.vlgmr.msra.gmra.mxu0 %vm1431_vm4, %v2455_v10 }
 0x8b6   :  { %4180 = vmatmul.mubr.msk.f32.vlgmr.msra.gmra.mxu1 %vm1431_vm4, %v2531_v11  ;;  %4183 = vmatpush3.xpose.msk.msra.mxu0 %vm1431_vm4, %v3593_v9  ;;  %v4158_v12 = vpop.f32.mrf.mxu0 }
 0x8b7   :  { %4192 = vmatpush3.xpose.msk.msra.mxu1 %vm1431_vm4, %v3593_v9  ;;  %v4163_v13 = vpop.f32.mrf.mxu1  ;;  %4184 = vmatprep.subr.mxu0 %v4377_v49 }
 0x8b8   :  { %4193 = vmatprep.subr.mxu1 %v4377_v49  ;;  %4188 = vmatprep.mubr.msk.f32.mxu0 %vm4382_vm1, %v4377_v49  ;;  %v3353_v13 = vld [vmem:[%s5178_s4 + $0x10] sm:$0xf] }
 0x8b9   :  { %4197 = vmatprep.mubr.msk.f32.mxu1 %vm4382_vm1, %v4377_v49 }
 0x8ba   :  { %4185 = vmatpush3.xpose.msk.msra.mxu0 %vm1431_vm4, %v3592_v14 }
 0x8bb   :  { %4194 = vmatpush3.xpose.msk.msra.mxu1 %vm1431_vm4, %v3592_v14  ;;  %4186 = vmatprep.subr.mxu0 %v4377_v49  ;;  %v3352_v14 = vld [vmem:[%s5178_s4 + $0x8] sm:$0xff] }
 0x8bc   :  { %4195 = vmatprep.subr.mxu1 %v4377_v49 }
 0x8be   :  { %4187 = vmatpush3.xpose.msk.msra.mxu0 %vm1431_vm4, %v3591_v15 }
 0x8bf   :  { %4196 = vmatpush3.xpose.msk.msra.mxu1 %vm1431_vm4, %v3591_v15  ;;  %4200 = vmatprep.subr.mxu0 %v4377_v49  ;;  %v3351_v15 = vld [vmem:[%s5178_s4] sm:$0xff] }
 0x8c0   :  { %4205 = vmatprep.subr.mxu1 %v4377_v49 }
 0x8c1   :  { %4189 = vmatmul.mubr.msk.f32.vlgmr.msra.gmra.mxu0 %vm1431_vm4, %v5015_v27 }
 0x8c2   :  { %4198 = vmatmul.mubr.msk.f32.vlgmr.msra.gmra.mxu1 %vm1431_vm4, %v5017_v28  ;;  %4202 = vmatprep.mubr.msk.f32.mxu0 %vm4382_vm1, %v4377_v49  ;;  %v4383_v28 = vmov 1.0  }
 0x8c3   :  { %4207 = vmatprep.mubr.msk.f32.mxu1 %vm4382_vm1, %v4377_v49 }
 0x975   :  { %v2617_v16 = vpop.f32.mrf.mxu0 }
 0x976   :  { %v2690_v17 = vpop.f32.mrf.mxu1 }
 0x977   :  { %v4172_v18 = vpop.f32.mrf.mxu0 }
 0x978   :  { %v4181_v19 = vpop.f32.mrf.mxu1 }
 0x981   :  { %v2772_v20 = vpop.f32.mrf.mxu0 }
 0x982   :  { %v2773_v21 = vadd.f32 %v2772_v20, %v2617_v16  ;;  %v2845_v22 = vpop.f32.mrf.mxu1 }
 0x983   :  { %v2846_v23 = vadd.f32 %v2845_v22, %v2690_v17  ;;  %v4190_v24 = vpop.f32.mrf.mxu0 }
 0x984   :  { %v2849_v25 = vadd.f32 %v2773_v21, %v4859_v41  ;;  %v4199_v26 = vpop.f32.mrf.mxu1 }
 0x985   :  { %v2850_v27 = vadd.f32 %v2846_v23, %v4854_v38 }
 0x986   :  { %4201 = vmatpush3.msk.msra.mxu0 %vm505_vm0, %v2849_v25 }
 0x987   :  { %4206 = vmatpush3.msk.msra.mxu1 %vm505_vm0, %v2850_v27  ;;  %4203 = vmatmul.mubr.msk.f32.vlgmr.msra.gmra.mxu0 %vm1609_vm6, %v4383_v28 }
 0x988   :  { %4208 = vmatmul.mubr.msk.f32.vlgmr.msra.gmra.mxu1 %vm1609_vm6, %v4383_v28  ;;  %4210 = vmatprep.subr.mxu0 %v4377_v49 }
 0x989   :  { %4215 = vmatprep.subr.mxu1 %v4377_v49  ;;  %4212 = vmatprep.mubr.msk.f32.mxu0 %vm4382_vm1, %v4377_v49 }
 0x98a   :  { %4217 = vmatprep.mubr.msk.f32.mxu1 %vm4382_vm1, %v4377_v49 }
 0xa47   :  { %v2923_v38 = vpop.f32.mrf.mxu0 }
 0xa48   :  { %v2996_v41 = vpop.f32.mrf.mxu1  ;;  %v3001_v29 = vsel %vm3000_vm7, %v2923_v38, 0.0 }
 0xa49   :  { %v3004_v30 = vsel %vm3000_vm7, %v2996_v41, 0.0  ;;  %3002 = vadd.xlane.f32.xlu0 %v3001_v29  ;;  %v4204_v31 = vpop.f32.mrf.mxu0 }
 0xa4a   :  { %3005 = vadd.xlane.f32.xlu1 %v3004_v30  ;;  %v4209_v34 = vpop.f32.mrf.mxu1 }
 0xad2   :  { %v3003_v39 = vpop.xlane.xlu0 %3002 }
 0xad3   :  { %v3006_v40 = vpop.xlane.xlu1 %3005  ;;  %v3007_v42 = vmul.f32 0.0125, %v3003_v39 }
 0xad4   :  { %v3008_v43 = vmul.f32 0.0125, %v3006_v40 }
 0xad5   :  { %v3012_v44 = vrot.slane %v3007_v42, %v3011_v37 }
 0xad6   :  { %v3016_v32 = vrot.slane %v3008_v43, %v3011_v37 }
 0xad7   :  { %v3017_v33 = vsub.f32 %v2849_v25, %v3012_v44 }
 0xad8   :  { %v3018_v45 = vsub.f32 %v2850_v27, %v3016_v32 }
 0xad9   :  { %v3019_v46 = vmul.f32 %v3017_v33, %v3017_v33 }
 0xada   :  { %v3020_v47 = vmul.f32 %v3018_v45, %v3018_v45 }
 0xadb   :  { %4211 = vmatpush3.msk.msra.mxu0 %vm505_vm0, %v3019_v46 }
 0xadc   :  { %4216 = vmatpush3.msk.msra.mxu1 %vm505_vm0, %v3020_v47  ;;  %4213 = vmatmul.mubr.msk.f32.vlgmr.msra.gmra.mxu0 %vm1609_vm6, %v4383_v28 }
 0xadd   :  { %4218 = vmatmul.mubr.msk.f32.vlgmr.msra.gmra.mxu1 %vm1609_vm6, %v4383_v28  ;;  %4220 = vmatprep.subr.mxu0 %v4377_v49 }
 0xade   :  { %4225 = vmatprep.subr.mxu1 %v4377_v49  ;;  %4222 = vmatprep.mubr.msk.f32.mxu0 %vm4382_vm1, %v4377_v49 }
 0xadf   :  { %4227 = vmatprep.mubr.msk.f32.mxu1 %vm4382_vm1, %v4377_v49 }
 0xb9c   :  { %v3090_v48 = vpop.f32.mrf.mxu0 }
 0xb9d   :  { %v3163_v50 = vpop.f32.mrf.mxu1  ;;  %v3167_v51 = vsel %vm3000_vm7, %v3090_v48, 0.0 }
 0xb9e   :  { %v3170_v52 = vsel %vm3000_vm7, %v3163_v50, 0.0  ;;  %3168 = vadd.xlane.f32.xlu0 %v3167_v51  ;;  %v4214_v53 = vpop.f32.mrf.mxu0 }
 0xb9f   :  { %3171 = vadd.xlane.f32.xlu1 %v3170_v52  ;;  %v4219_v54 = vpop.f32.mrf.mxu1 }
 0xc27   :  { %v3169_v55 = vpop.xlane.xlu0 %3168 }
 0xc28   :  { %v3172_v56 = vpop.xlane.xlu1 %3171  ;;  %v3173_v57 = vmul.f32 0.012658228, %v3169_v55 }
 0xc29   :  { %v3174_v58 = vmul.f32 0.012658228, %v3172_v56 }
 0xc2a   :  { %4354 = vrsqrt.f32 %v3173_v57  ;;  %vm3177_vm8 = vcmp.eq.f32.partialorder %v3173_v57, inf  ;;  %v3180_v63 = vand.u32 2147483648, %v3173_v57  ;;  %vm3179_vm10 = vcmp.eq.f32.partialorder %v3173_v57, 0.0 }
 0xc2b   :  { %4356 = vrsqrt.f32 %v3174_v58  ;;  %vm3184_vm9 = vcmp.eq.f32.partialorder %v3174_v58, inf  ;;  %v3187_v0 = vand.u32 2147483648, %v3174_v58  ;;  %vm3186_vm11 = vcmp.eq.f32.partialorder %v3174_v58, 0.0 }
 0xc37   :  { %v4355_v59 = vpop.eup %4354 }
 0xc38   :  { %v4357_v60 = vpop.eup %4356  ;;  %v3176_v61 = vmul.f32 %v4355_v59, %v3173_v57 }
 0xc39   :  { %v3183_v62 = vmul.f32 %v4357_v60, %v3174_v58 }
 0xc3a   :  { %v3178_v1 = vsel %vm3177_vm8, %v3173_v57, %v3176_v61 }
 0xc3b   :  { %v3185_v2 = vsel %vm3184_vm9, %v3174_v58, %v3183_v62  ;;  %v3181_v3 = vsel %vm3179_vm10, %v3180_v63, %v3178_v1 }
 0xc3c   :  { %v3188_v4 = vsel %vm3186_vm11, %v3187_v0, %v3185_v2  ;;  %v3189_v5 = vadd.f32 1e-06, %v3181_v3 }
 0xc3d   :  { %v3190_v6 = vadd.f32 1e-06, %v3188_v4 }
 0xc3e   :  { %v3194_v7 = vrot.slane %v3189_v5, %v3011_v37 }
 0xc3f   :  { %v3198_v8 = vrot.slane %v3190_v6, %v3011_v37 }
 0xc40   :  { %4358 = vrcp.f32 %v3194_v7 }
 0xc41   :  { %4360 = vrcp.f32 %v3198_v8 }
 0xc4d   :  { %v4359_v9 = vpop.eup %4358 }
 0xc4e   :  { %v4361_v10 = vpop.eup %4360  ;;  %v3200_v11 = vmul.f32 %v4359_v9, %v3017_v33 }
 0xc4f   :  { %v3202_v12 = vmul.f32 %v4361_v10, %v3018_v45 }
 0xc50   :  { %4221 = vmatpush3.msk.msra.mxu0 %vm505_vm0, %v3200_v11 }
 0xc51   :  { %4226 = vmatpush3.msk.msra.mxu1 %vm505_vm0, %v3202_v12  ;;  %4223 = vmatmul.mubr.msk.f32.vlgmr.msra.gmra.mxu0 %vm1609_vm6, %v4383_v28 }
 0xc52   :  { %4228 = vmatmul.mubr.msk.f32.vlgmr.msra.gmra.mxu1 %vm1609_vm6, %v4383_v28  ;;  %4230 = vmatprep.subr.mxu0 %v4377_v49  ;;  %v3506_v28 = vld [vmem:[%s5177_s5 + $0x3] sm:$0x1] }
 0xc53   :  { %4239 = vmatprep.subr.mxu1 %v4377_v49  ;;  %4231 = vmatpush3.msk.msra.mxu0 %vm505_vm0, %v3353_v13 }
 0xc54   :  { %4240 = vmatpush3.msk.msra.mxu1 %vm505_vm0, %v3353_v13  ;;  %4232 = vmatprep.subr.mxu0 %v4377_v49 }
 0xc55   :  { %4241 = vmatprep.subr.mxu1 %v4377_v49  ;;  %4236 = vmatprep.mubr.msk.f32.mxu0 %vm4382_vm1, %v4377_v49 }
 0xc56   :  { %4245 = vmatprep.mubr.msk.f32.mxu1 %vm4382_vm1, %v4377_v49  ;;  %4233 = vmatpush3.msra.mxu0 %v3352_v14 }
 0xc57   :  { %4242 = vmatpush3.msra.mxu1 %v3352_v14  ;;  %4234 = vmatprep.subr.mxu0 %v4377_v49 }
 0xc58   :  { %4243 = vmatprep.subr.mxu1 %v4377_v49  ;;  %4235 = vmatpush3.msra.mxu0 %v3351_v15  ;;  %v3354_v49 = vld [vmem:[%s5177_s5 + $0x1] sm:$0x1] }
 0xc59   :  { %4244 = vmatpush3.msra.mxu1 %v3351_v15 }
 0xd11   :  { %v3272_v16 = vpop.f32.mrf.mxu0 }
 0xd12   :  { %v3349_v17 = vmul.f32 0.25, %v3272_v16  ;;  %v3345_v18 = vpop.f32.mrf.mxu1 }
 0xd13   :  { %v3350_v19 = vmul.f32 0.25, %v3345_v18  ;;  %v4224_v20 = vpop.f32.mrf.mxu0 }
 0xd14   :  { %v4229_v21 = vpop.f32.mrf.mxu1  ;;  %4237 = vmatmul.mubr.msk.f32.vlgmr.msra.gmra.mxu0 %vm995_vm3, %v3349_v17 }
 0xd15   :  { %4246 = vmatmul.mubr.msk.f32.vlgmr.msra.gmra.mxu1 %vm995_vm3, %v3350_v19 }
 0xdd4   :  { %v3427_v22 = vpop.f32.mrf.mxu0 }
 0xdd5   :  { %v3428_v23 = vadd.f32 %v3427_v22, %v3354_v49  ;;  %v3500_v24 = vpop.f32.mrf.mxu1 }
 0xdd6   :  { %v3501_v25 = vadd.f32 %v3500_v24, %v3354_v49  ;;  %v4238_v26 = vpop.f32.mrf.mxu0 }
 0xdd7   :  { %4362 = vtanh.f32 %v3428_v23  ;;  %v4247_v27 = vpop.f32.mrf.mxu1 }
 0xdd8   :  { %4364 = vtanh.f32 %v3501_v25 }
 0xde4   :  { %v4363_v38 = vpop.eup %4362 }
 0xde5   :  { %v4365_v41 = vpop.eup %4364  ;;  %v3507_v29 = vmul.f32 %v4363_v38, %v3506_v28 }
 0xde6   :  { %v3508_v30 = vmul.f32 %v4365_v41, %v3506_v28 }
 0xde7   :  { %v3510_v31 = vsel %vm3509_vm12, %v3507_v29, 0.0 }
 0xde8   :  { %v3513_v34 = vsel %vm3509_vm12, %v3508_v30, 0.0  ;;  %3511 = vadd.xlane.f32.xlu0 %v3510_v31 }
 0xde9   :  { %3514 = vadd.xlane.f32.xlu1 %v3513_v34 }
 0xe71   :  { %v3512_v36 = vpop.xlane.xlu0 %3511 }
 0xe72   :  { %v3515_v37 = vpop.xlane.xlu1 %3514  ;;  %v3517_v39 = vadd.f32 %v3516_v35, %v3512_v36 }
 0xe73   :  { %v3518_v40 = vadd.f32 %v3516_v35, %v3515_v37 }
 0xe74   :  { %3520 = vst.msk [vmem:[%s5179_s6] sm:$0x1] %vm3519_vm13, %v3517_v39 }
 0xe75   :  { %3521 = vst.msk [vmem:[%s5179_s6 + $0x1] sm:$0x1] %vm3519_vm13, %v3518_v40 }

</bundles_post_ra>
